<compile_context>
chip_gen: v7x
topology: tpu7x:2x2x1
jax: 0.10.0
libtpu: 0.0.40
codegen_flags: <defaults>
</compile_context>

<pallas_src>
import functools

import numpy as np
import jax
import jax.numpy as jnp
from jax import lax
from jax.experimental import pallas as pl
from jax.experimental.pallas import tpu as pltpu

LANES = 128   # every channel dim is lane-padded to 128 (lane-dense stores, full MXU N)
EPS = 1e-5


# ----------------------------------------------------------------------------
# Pallas kernels
# ----------------------------------------------------------------------------
def _stem_kernel(a_ref, w_ref, b_ref, o_ref):
    # bf16 im2col A @ bf16 folded-BN W  (MXU, f32 accum)  -> +bias -> ReLU
    acc = jnp.dot(a_ref[...], w_ref[...], preferred_element_type=jnp.float32)
    o_ref[...] = jnp.maximum(acc + b_ref[...], 0.0).astype(o_ref.dtype)


def _block_kernel(taps_ref, masks_ref, wds_ref, bds_ref, w1_ref, b1_ref,
                  w2_ref, b2_ref, w3_ref, b3_ref, o_ref, *, n_pix):
    """Whole bottleneck block + residual + ReLU + global avg-pool, one image.

    taps_ref : (1, 9, n_pix, 128) bf16  -- 9 spatially shifted copies of the
               pooled activation (tap 4 == the unshifted activation).
    masks_ref: (9, n_pix, 128) bf16     -- 1 where the shifted pixel is in
               bounds, 0 where it came from zero padding.
    All weights are BN-folded, channel-padded to 128, bf16; biases f32.
    """
    x = taps_ref[0, 4]                                           # (n_pix, 128)

    # projection shortcut: 1x1 conv + BN (no ReLU)
    identity = jnp.dot(x, wds_ref[...],
                       preferred_element_type=jnp.float32) + bds_ref[...]

    # c1 (1x1) + c2 (3x3) fused: since c1 is pointwise,
    #   shift_t(relu(x@W1+b1)) == mask_t * relu(shift_t(x)@W1+b1)
    acc2 = jnp.zeros((n_pix, LANES), jnp.float32)
    for t in range(9):                                           # static unroll
        xt = taps_ref[0, t]                                      # (n_pix, 128) bf16
        h = jnp.dot(xt, w1_ref[...],
                    preferred_element_type=jnp.float32) + b1_ref[...]
        h = jnp.maximum(h, 0.0) * masks_ref[t]
        acc2 = acc2 + jnp.dot(h.astype(jnp.bfloat16), w2_ref[t],
                              preferred_element_type=jnp.float32)
    y2 = jnp.maximum(acc2 + b2_ref[...], 0.0)

    # c3 (1x1) + BN + residual + ReLU + global average pool
    y3 = jnp.dot(y2.astype(jnp.bfloat16), w3_ref[...],
                 preferred_element_type=jnp.float32) + b3_ref[...] + identity
    y3 = jnp.maximum(y3, 0.0)
    o_ref[0] = (jnp.sum(y3, axis=0, keepdims=True) *
                (1.0 / float(n_pix))).astype(o_ref.dtype)


# ----------------------------------------------------------------------------
# Helpers
# ----------------------------------------------------------------------------
def _round_up(x, m):
    return (x + m - 1) // m * m


def _pick_tile_m(m, cap=256):
    """Largest multiple-of-8 divisor of m that is <= cap, preferring >=2 tiles
    (keeps both v7x TensorCores busy at negligible cost elsewhere)."""
    best = None
    for t in range(min(cap, m), 7, -1):
        if m % t == 0 and t % 8 == 0:
            if m // t >= 2:
                return t
            if best is None:
                best = t
    return best if best is not None else m


def _fold_bn(gamma, beta, mean, var, eps=EPS):
    s = gamma / jnp.sqrt(var + eps)
    return s, beta - mean * s


def _pad2(w2d, rows, cols):
    r, c = w2d.shape
    return jnp.pad(w2d, ((0, rows - r), (0, cols - c)))


# ----------------------------------------------------------------------------
# One-time parameter prep (BN fold, padding, bf16 cast) — hoisted out of forward
# ----------------------------------------------------------------------------
def prepare_params(p, pooled_hw=(8, 8)):
    prep = {}

    def fold_1x1(w4d, bnp, cin, cout):
        s, b = _fold_bn(*bnp)
        w = (w4d * s.reshape(1, 1, 1, -1)).reshape(cin, cout)
        wq = _pad2(w, LANES, LANES).astype(jnp.bfloat16)
        bq = jnp.pad(b, (0, LANES - cout)).reshape(1, LANES).astype(jnp.float32)
        return wq, bq

    # stem 7x7/2: 3 -> 16, K padded 147 -> 256 (multiple of 256 for the MXU)
    s, b = _fold_bn(*p["stem_bn"])
    w = (p["stem_w"] * s.reshape(1, 1, 1, -1)).reshape(7 * 7 * 3, 16)
    kpad = _round_up(7 * 7 * 3, LANES)
    prep["stem_w"] = _pad2(w, kpad, LANES).astype(jnp.bfloat16)
    prep["stem_b"] = jnp.pad(b, (0, LANES - 16)).reshape(1, LANES).astype(jnp.float32)

    prep["wds"], prep["bds"] = fold_1x1(p["ds_w"], p["ds_bn"], 16, 64)
    prep["w1"], prep["b1"] = fold_1x1(p["c1_w"], p["c1_bn"], 16, 16)
    prep["w3"], prep["b3"] = fold_1x1(p["c3_w"], p["c3_bn"], 16, 64)

    # c2 3x3: per-tap (Cin->Cout) weights stacked along a leading tap axis
    s, b = _fold_bn(*p["c2_bn"])
    w = p["c2_w"] * s.reshape(1, 1, 1, -1)                        # (3,3,16,16)
    taps = [_pad2(w[di, dj], LANES, LANES) for di in range(3) for dj in range(3)]
    prep["w2"] = jnp.stack(taps, axis=0).astype(jnp.bfloat16)     # (9,128,128)
    prep["b2"] = jnp.pad(b, (0, LANES - 16)).reshape(1, LANES).astype(jnp.float32)

    # static validity masks for the 9 conv taps (zero rows where the shifted
    # pixel came from the zero spatial padding)
    hp, wp = pooled_hw
    ii, jj = jnp.meshgrid(jnp.arange(hp), jnp.arange(wp), indexing="ij")
    ms = []
    for di in range(3):
        for dj in range(3):
            valid = ((ii + di - 1 >= 0) & (ii + di - 1 < hp) &
                     (jj + dj - 1 >= 0) & (jj + dj - 1 < wp))
            ms.append(jnp.broadcast_to(valid.reshape(hp * wp, 1),
                                       (hp * wp, LANES)))
    prep["c2_masks"] = jnp.stack(ms, axis=0).astype(jnp.bfloat16)  # (9,64,128)
    return prep


# ----------------------------------------------------------------------------
# Layer wrappers (pallas_call sites + minimal XLA glue)
# ----------------------------------------------------------------------------
def stem_conv(x_bf16, w, b):
    """7x7/2 conv + folded BN + ReLU.  x: NHWC bf16 (already cast)."""
    B, H, W, _ = x_bf16.shape
    xp = jnp.pad(x_bf16, ((0, 0), (3, 3), (3, 3), (0, 0)))
    Ho = (H + 6 - 7) // 2 + 1
    Wo = (W + 6 - 7) // 2 + 1
    cols = []
    for ki in range(7):
        for kj in range(7):
            cols.append(xp[:, ki:ki + 2 * Ho:2, kj:kj + 2 * Wo:2, :])
    A = jnp.stack(cols, axis=3).reshape(B * Ho * Wo, 7 * 7 * 3)
    Kp = w.shape[0]
    A = jnp.pad(A, ((0, 0), (0, Kp - A.shape[1])))                # K 147 -> 256
    M = A.shape[0]
    TM = _pick_tile_m(M)

    out = pl.pallas_call(
        _stem_kernel,
        out_shape=jax.ShapeDtypeStruct((M, LANES), jnp.bfloat16),
        grid=(M // TM,),
        in_specs=[
            pl.BlockSpec((TM, Kp), lambda i: (i, 0)),
            pl.BlockSpec((Kp, LANES), lambda i: (0, 0)),
            pl.BlockSpec((1, LANES), lambda i: (0, 0)),
        ],
        out_specs=pl.BlockSpec((TM, LANES), lambda i: (i, 0)),
        compiler_params=pltpu.CompilerParams(dimension_semantics=("parallel",)),
    )(A, w, b)
    return out.reshape(B, Ho, Wo, LANES)


def maxpool3x3s2(x):
    """3x3/2 max pool (zero padding is exact: input is post-ReLU >= 0).
    Fused by XLA into one small elementwise-max pass over the padded activation
    (no 9x HBM stack, no extra kernel launch)."""
    B, H, W, C = x.shape
    xp = jnp.pad(x, ((0, 0), (1, 1), (1, 1), (0, 0)))
    Ho = (H + 2 - 3) // 2 + 1
    Wo = (W + 2 - 3) // 2 + 1
    out = None
    for di in range(3):
        for dj in range(3):
            wnd = xp[:, di:di + 2 * Ho:2, dj:dj + 2 * Wo:2, :]
            out = wnd if out is None else jnp.maximum(out, wnd)
    return out


def bottleneck_head(x_pool, prep):
    """Fused bottleneck block + residual + ReLU + global avg pool -> (B, 128)."""
    B, Hp, Wp, C = x_pool.shape
    n_pix = Hp * Wp

    # 9 spatially shifted copies of the pooled activation (tap 4 = unshifted).
    pp = jnp.pad(x_pool, ((0, 0), (1, 1), (1, 1), (0, 0)))
    taps = []
    for di in range(3):
        for dj in range(3):
            taps.append(pp[:, di:di + Hp, dj:dj + Wp, :].reshape(B, n_pix, C))
    taps = jnp.stack(taps, axis=1)                                # (B,9,n_pix,128) bf16

    out = pl.pallas_call(
        functools.partial(_block_kernel, n_pix=n_pix),
        out_shape=jax.ShapeDtypeStruct((B, 1, LANES), jnp.float32),
        grid=(B,),
        in_specs=[
            pl.BlockSpec((1, 9, n_pix, LANES), lambda b: (b, 0, 0, 0)),
            pl.BlockSpec((9, n_pix, LANES), lambda b: (0, 0, 0)),
            pl.BlockSpec((LANES, LANES), lambda b: (0, 0)),   # wds
            pl.BlockSpec((1, LANES), lambda b: (0, 0)),       # bds
            pl.BlockSpec((LANES, LANES), lambda b: (0, 0)),   # w1
            pl.BlockSpec((1, LANES), lambda b: (0, 0)),       # b1
            pl.BlockSpec((9, LANES, LANES), lambda b: (0, 0, 0)),  # w2 taps
            pl.BlockSpec((1, LANES), lambda b: (0, 0)),       # b2
            pl.BlockSpec((LANES, LANES), lambda b: (0, 0)),   # w3
            pl.BlockSpec((1, LANES), lambda b: (0, 0)),       # b3
        ],
        out_specs=pl.BlockSpec((1, 1, LANES), lambda b: (b, 0, 0)),
        compiler_params=pltpu.CompilerParams(dimension_semantics=("parallel",)),
    )(taps, prep["c2_masks"], prep["wds"], prep["bds"], prep["w1"], prep["b1"],
      prep["w2"], prep["b2"], prep["w3"], prep["b3"])
    return out.reshape(B, LANES)


# ----------------------------------------------------------------------------
# Parameters (deterministic stand-in for the pretrained backbone)
# ----------------------------------------------------------------------------
def _bn_params(key, c):
    kg, kb, km, kv = jax.random.split(key, 4)
    gamma = 1.0 + 0.1 * jax.random.normal(kg, (c,), jnp.float32)
    beta = 0.1 * jax.random.normal(kb, (c,), jnp.float32)
    mean = 0.1 * jax.random.normal(km, (c,), jnp.float32)
    var = 1.0 + 0.1 * jnp.abs(jax.random.normal(kv, (c,), jnp.float32))
    return (gamma, beta, mean, var)


def _conv_w(key, kh, kw, cin, cout):
    fan_in = kh * kw * cin
    return jax.random.normal(key, (kh, kw, cin, cout), jnp.float32) * (
        (2.0 / fan_in) ** 0.5)


def init_params(key):
    ks = jax.random.split(key, 10)
    p = {}
    p["stem_w"] = _conv_w(ks[0], 7, 7, 3, 16)
    p["stem_bn"] = _bn_params(ks[1], 16)
    p["c1_w"] = _conv_w(ks[2], 1, 1, 16, 16)
    p["c1_bn"] = _bn_params(ks[3], 16)
    p["c2_w"] = _conv_w(ks[4], 3, 3, 16, 16)
    p["c2_bn"] = _bn_params(ks[5], 16)
    p["c3_w"] = _conv_w(ks[6], 1, 1, 16, 64)
    p["c3_bn"] = _bn_params(ks[7], 64)
    p["ds_w"] = _conv_w(ks[8], 1, 1, 16, 64)
    p["ds_bn"] = _bn_params(ks[9], 64)
    return p


# ----------------------------------------------------------------------------
# Forward pass:  x = backbone(x); x = x.view(x.size(0), -1)
# ----------------------------------------------------------------------------
def geo_embedding_forward(x_nchw, prep):
    # NCHW (PyTorch) -> NHWC; bf16 before patch extraction (halves im2col bytes)
    x = jnp.transpose(x_nchw, (0, 2, 3, 1)).astype(jnp.bfloat16)
    y = stem_conv(x, prep["stem_w"], prep["stem_b"])        # (B,16,16,128) bf16
    yp = maxpool3x3s2(y)                                    # (B, 8, 8,128) bf16
    emb = bottleneck_head(yp, prep)                         # (B,128) f32
    return emb[:, :64]                                      # drop lane padding


# ----------------------------------------------------------------------------
# Pure-JAX reference (f32, lax.conv / reduce_window) for a tolerance check
# ----------------------------------------------------------------------------
def reference_forward(x_nchw, p):
    x = jnp.transpose(x_nchw, (0, 2, 3, 1)).astype(jnp.float32)

    def conv(h, w, stride, pad):
        return lax.conv_general_dilated(
            h, w, (stride, stride), [(pad, pad), (pad, pad)],
            dimension_numbers=("NHWC", "HWIO", "NHWC"))

    def bn(h, bnp):
        g, b, m, v = bnp
        return (h - m) * (g / jnp.sqrt(v + EPS)) + b

    h = jax.nn.relu(bn(conv(x, p["stem_w"], 2, 3), p["stem_bn"]))
    h = lax.reduce_window(h, -jnp.inf, lax.max, (1, 3, 3, 1), (1, 2, 2, 1),
                          ((0, 0), (1, 1), (1, 1), (0, 0)))
    idn = bn(conv(h, p["ds_w"], 1, 0), p["ds_bn"])
    t = jax.nn.relu(bn(conv(h, p["c1_w"], 1, 0), p["c1_bn"]))
    t = jax.nn.relu(bn(conv(t, p["c2_w"], 1, 1), p["c2_bn"]))
    t = jax.nn.relu(bn(conv(t, p["c3_w"], 1, 0), p["c3_bn"]) + idn)
    return jnp.mean(t, axis=(1, 2))


if __name__ == "__main__":
    key = jax.random.PRNGKey(0)
    k_x, k_p = jax.random.split(key)
    # small NCHW input consistent with the module's image-model forward
    x = jax.random.normal(k_x, (2, 3, 32, 32), jnp.float32)
    params = init_params(k_p)
    prep = prepare_params(params)          # one-time: BN fold / pad / bf16 cast

    fwd = jax.jit(geo_embedding_forward)
    out = jax.block_until_ready(fwd(x, prep))

    assert out.shape == (2, 64), out.shape
    assert out.dtype == jnp.float32
    assert bool(jnp.all(jnp.isfinite(out)))

    # bf16 activation pipeline vs f32 reference -> loose tolerance
    ref = jax.block_until_ready(jax.jit(reference_forward)(x, params))
    np.testing.assert_allclose(np.asarray(out), np.asarray(ref),
                               rtol=1e-1, atol=1e-1)

    print("KERNEL_OK")
</pallas_src>

<mosaic_0001>
module attributes {stable_mosaic.version = 11 : i64} {
  func.func @_stem_kernel(%arg0: i32, %arg1: memref<256x256xbf16, #tpu.memory_space<vmem>>, %arg2: memref<256x128xbf16, #tpu.memory_space<vmem>>, %arg3: memref<1x128xf32, #tpu.memory_space<vmem>>, %arg4: memref<256x128xbf16, #tpu.memory_space<vmem>>) attributes {dimension_semantics = [#tpu.dimension_semantics<parallel>], iteration_bounds = array<i64: 2>, scalar_prefetch = 0 : i64, scratch_operands = 0 : i64, tpu.core_type = #tpu.core_type<tc>, window_params = [{transform_indices = @transform_0, window_bounds = array<i64: 256, 256>}, {pipeline_mode = #tpu.pipeline_mode<synchronous>, transform_indices = @transform_1, window_bounds = array<i64: 256, 128>}, {pipeline_mode = #tpu.pipeline_mode<synchronous>, transform_indices = @transform_2, window_bounds = array<i64: 1, 128>}, {transform_indices = @transform_3, window_bounds = array<i64: 256, 128>}]} {
    %c0 = arith.constant 0 : index
    %c0_0 = arith.constant 0 : index
    %0 = vector.load %arg1[%c0, %c0_0] : memref<256x256xbf16, #tpu.memory_space<vmem>>, vector<256x256xbf16>
    %c0_1 = arith.constant 0 : index
    %c0_2 = arith.constant 0 : index
    %1 = vector.load %arg2[%c0_1, %c0_2] : memref<256x128xbf16, #tpu.memory_space<vmem>>, vector<256x128xbf16>
    %cst = arith.constant dense<0.000000e+00> : vector<256x128xf32>
    %2 = tpu.matmul %0, %1, %cst {dimension_numbers = #tpu.dot_dimension_numbers<[1], [0], [0], [1], [0, 0, 1, 1], [], []>} : vector<256x256xbf16>, vector<256x128xbf16>, vector<256x128xf32> -> vector<256x128xf32>
    %c0_3 = arith.constant 0 : index
    %c0_4 = arith.constant 0 : index
    %3 = vector.load %arg3[%c0_3, %c0_4] : memref<1x128xf32, #tpu.memory_space<vmem>>, vector<1x128xf32>
    %4 = vector.broadcast %3 : vector<1x128xf32> to vector<256x128xf32>
    %5 = arith.addf %2, %4 : vector<256x128xf32>
    %cst_5 = arith.constant 0.000000e+00 : f32
    %6 = vector.broadcast %cst_5 : f32 to vector<256x128xf32>
    %7 = arith.maximumf %5, %6 : vector<256x128xf32>
    %8 = arith.truncf %7 : vector<256x128xf32> to vector<256x128xbf16>
    %c0_6 = arith.constant 0 : index
    %c0_7 = arith.constant 0 : index
    %9 = vector.load %arg4[%c0_6, %c0_7] : memref<256x128xbf16, #tpu.memory_space<vmem>>, vector<256x128xbf16>
    tpu.vector_store %arg4[%c0_6, %c0_7], %8 {strides = array<i32>} : memref<256x128xbf16, #tpu.memory_space<vmem>>, vector<256x128xbf16>,
    return
  }
  func.func @transform_0(%arg0: i32) -> (i32, i32) {
    %c0_i32 = arith.constant 0 : i32
    %c0_i32_0 = arith.constant 0 : i32
    return %arg0, %c0_i32 : i32, i32
  }
  func.func @transform_1(%arg0: i32) -> (i32, i32) {
    %c0_i32 = arith.constant 0 : i32
    %c0_i32_0 = arith.constant 0 : i32
    %c0_i32_1 = arith.constant 0 : i32
    return %c0_i32, %c0_i32_0 : i32, i32
  }
  func.func @transform_2(%arg0: i32) -> (i32, i32) {
    %c0_i32 = arith.constant 0 : i32
    %c0_i32_0 = arith.constant 0 : i32
    %c0_i32_1 = arith.constant 0 : i32
    return %c0_i32, %c0_i32_0 : i32, i32
  }
  func.func @transform_3(%arg0: i32) -> (i32, i32) {
    %c0_i32 = arith.constant 0 : i32
    %c0_i32_0 = arith.constant 0 : i32
    return %arg0, %c0_i32 : i32, i32
  }
}

module attributes {stable_mosaic.version = 11 : i64} {
  func.func @_block_kernel(%arg0: i32, %arg1: memref<1x9x64x128xbf16, #tpu.memory_space<vmem>>, %arg2: memref<9x64x128xbf16, #tpu.memory_space<vmem>>, %arg3: memref<128x128xbf16, #tpu.memory_space<vmem>>, %arg4: memref<1x128xf32, #tpu.memory_space<vmem>>, %arg5: memref<128x128xbf16, #tpu.memory_space<vmem>>, %arg6: memref<1x128xf32, #tpu.memory_space<vmem>>, %arg7: memref<9x128x128xbf16, #tpu.memory_space<vmem>>, %arg8: memref<1x128xf32, #tpu.memory_space<vmem>>, %arg9: memref<128x128xbf16, #tpu.memory_space<vmem>>, %arg10: memref<1x128xf32, #tpu.memory_space<vmem>>, %arg11: memref<1x1x128xf32, #tpu.memory_space<vmem>>) attributes {dimension_semantics = [#tpu.dimension_semantics<parallel>], iteration_bounds = array<i64: 2>, scalar_prefetch = 0 : i64, scratch_operands = 0 : i64, tpu.core_type = #tpu.core_type<tc>, window_params = [{transform_indices = @transform_0, window_bounds = array<i64: 1, 9, 64, 128>}, {pipeline_mode = #tpu.pipeline_mode<synchronous>, transform_indices = @transform_1, window_bounds = array<i64: 9, 64, 128>}, {pipeline_mode = #tpu.pipeline_mode<synchronous>, transform_indices = @transform_2, window_bounds = array<i64: 128, 128>}, {pipeline_mode = #tpu.pipeline_mode<synchronous>, transform_indices = @transform_3, window_bounds = array<i64: 1, 128>}, {pipeline_mode = #tpu.pipeline_mode<synchronous>, transform_indices = @transform_4, window_bounds = array<i64: 128, 128>}, {pipeline_mode = #tpu.pipeline_mode<synchronous>, transform_indices = @transform_5, window_bounds = array<i64: 1, 128>}, {pipeline_mode = #tpu.pipeline_mode<synchronous>, transform_indices = @transform_6, window_bounds = array<i64: 9, 128, 128>}, {pipeline_mode = #tpu.pipeline_mode<synchronous>, transform_indices = @transform_7, window_bounds = array<i64: 1, 128>}, {pipeline_mode = #tpu.pipeline_mode<synchronous>, transform_indices = @transform_8, window_bounds = array<i64: 128, 128>}, {pipeline_mode = #tpu.pipeline_mode<synchronous>, transform_indices = @transform_9, window_bounds = array<i64: 1, 128>}, {transform_indices = @transform_10, window_bounds = array<i64: 1, 1, 128>}]} {
    %c0 = arith.constant 0 : index
    %c4 = arith.constant 4 : index
    %c0_0 = arith.constant 0 : index
    %c0_1 = arith.constant 0 : index
    %0 = vector.load %arg1[%c0, %c4, %c0_0, %c0_1] : memref<1x9x64x128xbf16, #tpu.memory_space<vmem>>, vector<1x1x64x128xbf16>
    %1 = vector.shape_cast %0 : vector<1x1x64x128xbf16> to vector<64x128xbf16>
    %c0_2 = arith.constant 0 : index
    %c0_3 = arith.constant 0 : index
    %2 = vector.load %arg3[%c0_2, %c0_3] : memref<128x128xbf16, #tpu.memory_space<vmem>>, vector<128x128xbf16>
    %cst = arith.constant dense<0.000000e+00> : vector<64x128xf32>
    %3 = tpu.matmul %1, %2, %cst {dimension_numbers = #tpu.dot_dimension_numbers<[1], [0], [0], [1], [0, 0, 1, 1], [], []>} : vector<64x128xbf16>, vector<128x128xbf16>, vector<64x128xf32> -> vector<64x128xf32>
    %c0_4 = arith.constant 0 : index
    %c0_5 = arith.constant 0 : index
    %4 = vector.load %arg4[%c0_4, %c0_5] : memref<1x128xf32, #tpu.memory_space<vmem>>, vector<1x128xf32>
    %5 = vector.broadcast %4 : vector<1x128xf32> to vector<64x128xf32>
    %6 = arith.addf %3, %5 : vector<64x128xf32>
    %cst_6 = arith.constant 0.000000e+00 : f32
    %7 = vector.broadcast %cst_6 : f32 to vector<64x128xf32>
    %c0_7 = arith.constant 0 : index
    %c0_8 = arith.constant 0 : index
    %c0_9 = arith.constant 0 : index
    %c0_10 = arith.constant 0 : index
    %8 = vector.load %arg1[%c0_7, %c0_8, %c0_9, %c0_10] : memref<1x9x64x128xbf16, #tpu.memory_space<vmem>>, vector<1x1x64x128xbf16>
    %9 = vector.shape_cast %8 : vector<1x1x64x128xbf16> to vector<64x128xbf16>
    %c0_11 = arith.constant 0 : index
    %c0_12 = arith.constant 0 : index
    %10 = vector.load %arg5[%c0_11, %c0_12] : memref<128x128xbf16, #tpu.memory_space<vmem>>, vector<128x128xbf16>
    %cst_13 = arith.constant dense<0.000000e+00> : vector<64x128xf32>
    %11 = tpu.matmul %9, %10, %cst_13 {dimension_numbers = #tpu.dot_dimension_numbers<[1], [0], [0], [1], [0, 0, 1, 1], [], []>} : vector<64x128xbf16>, vector<128x128xbf16>, vector<64x128xf32> -> vector<64x128xf32>
    %c0_14 = arith.constant 0 : index
    %c0_15 = arith.constant 0 : index
    %12 = vector.load %arg6[%c0_14, %c0_15] : memref<1x128xf32, #tpu.memory_space<vmem>>, vector<1x128xf32>
    %13 = vector.broadcast %12 : vector<1x128xf32> to vector<64x128xf32>
    %14 = arith.addf %11, %13 : vector<64x128xf32>
    %cst_16 = arith.constant 0.000000e+00 : f32
    %15 = vector.broadcast %cst_16 : f32 to vector<64x128xf32>
    %16 = arith.maximumf %14, %15 : vector<64x128xf32>
    %c0_17 = arith.constant 0 : index
    %c0_18 = arith.constant 0 : index
    %c0_19 = arith.constant 0 : index
    %17 = vector.load %arg2[%c0_17, %c0_18, %c0_19] : memref<9x64x128xbf16, #tpu.memory_space<vmem>>, vector<1x64x128xbf16>
    %18 = vector.shape_cast %17 : vector<1x64x128xbf16> to vector<64x128xbf16>
    %19 = arith.extf %18 : vector<64x128xbf16> to vector<64x128xf32>
    %20 = arith.mulf %16, %19 : vector<64x128xf32>
    %21 = arith.truncf %20 : vector<64x128xf32> to vector<64x128xbf16>
    %c0_20 = arith.constant 0 : index
    %c0_21 = arith.constant 0 : index
    %c0_22 = arith.constant 0 : index
    %22 = vector.load %arg7[%c0_20, %c0_21, %c0_22] : memref<9x128x128xbf16, #tpu.memory_space<vmem>>, vector<1x128x128xbf16>
    %23 = vector.shape_cast %22 : vector<1x128x128xbf16> to vector<128x128xbf16>
    %cst_23 = arith.constant dense<0.000000e+00> : vector<64x128xf32>
    %24 = tpu.matmul %21, %23, %cst_23 {dimension_numbers = #tpu.dot_dimension_numbers<[1], [0], [0], [1], [0, 0, 1, 1], [], []>} : vector<64x128xbf16>, vector<128x128xbf16>, vector<64x128xf32> -> vector<64x128xf32>
    %25 = arith.addf %7, %24 : vector<64x128xf32>
    %c0_24 = arith.constant 0 : index
    %c1 = arith.constant 1 : index
    %c0_25 = arith.constant 0 : index
    %c0_26 = arith.constant 0 : index
    %26 = vector.load %arg1[%c0_24, %c1, %c0_25, %c0_26] : memref<1x9x64x128xbf16, #tpu.memory_space<vmem>>, vector<1x1x64x128xbf16>
    %27 = vector.shape_cast %26 : vector<1x1x64x128xbf16> to vector<64x128xbf16>
    %c0_27 = arith.constant 0 : index
    %c0_28 = arith.constant 0 : index
    %28 = vector.load %arg5[%c0_27, %c0_28] : memref<128x128xbf16, #tpu.memory_space<vmem>>, vector<128x128xbf16>
    %cst_29 = arith.constant dense<0.000000e+00> : vector<64x128xf32>
    %29 = tpu.matmul %27, %28, %cst_29 {dimension_numbers = #tpu.dot_dimension_numbers<[1], [0], [0], [1], [0, 0, 1, 1], [], []>} : vector<64x128xbf16>, vector<128x128xbf16>, vector<64x128xf32> -> vector<64x128xf32>
    %c0_30 = arith.constant 0 : index
    %c0_31 = arith.constant 0 : index
    %30 = vector.load %arg6[%c0_30, %c0_31] : memref<1x128xf32, #tpu.memory_space<vmem>>, vector<1x128xf32>
    %31 = vector.broadcast %30 : vector<1x128xf32> to vector<64x128xf32>
    %32 = arith.addf %29, %31 : vector<64x128xf32>
    %cst_32 = arith.constant 0.000000e+00 : f32
    %33 = vector.broadcast %cst_32 : f32 to vector<64x128xf32>
    %34 = arith.maximumf %32, %33 : vector<64x128xf32>
    %c1_33 = arith.constant 1 : index
    %c0_34 = arith.constant 0 : index
    %c0_35 = arith.constant 0 : index
    %35 = vector.load %arg2[%c1_33, %c0_34, %c0_35] : memref<9x64x128xbf16, #tpu.memory_space<vmem>>, vector<1x64x128xbf16>
    %36 = vector.shape_cast %35 : vector<1x64x128xbf16> to vector<64x128xbf16>
    %37 = arith.extf %36 : vector<64x128xbf16> to vector<64x128xf32>
    %38 = arith.mulf %34, %37 : vector<64x128xf32>
    %39 = arith.truncf %38 : vector<64x128xf32> to vector<64x128xbf16>
    %c1_36 = arith.constant 1 : index
    %c0_37 = arith.constant 0 : index
    %c0_38 = arith.constant 0 : index
    %40 = vector.load %arg7[%c1_36, %c0_37, %c0_38] : memref<9x128x128xbf16, #tpu.memory_space<vmem>>, vector<1x128x128xbf16>
    %41 = vector.shape_cast %40 : vector<1x128x128xbf16> to vector<128x128xbf16>
    %cst_39 = arith.constant dense<0.000000e+00> : vector<64x128xf32>
    %42 = tpu.matmul %39, %41, %cst_39 {dimension_numbers = #tpu.dot_dimension_numbers<[1], [0], [0], [1], [0, 0, 1, 1], [], []>} : vector<64x128xbf16>, vector<128x128xbf16>, vector<64x128xf32> -> vector<64x128xf32>
    %43 = arith.addf %25, %42 : vector<64x128xf32>
    %c0_40 = arith.constant 0 : index
    %c2 = arith.constant 2 : index
    %c0_41 = arith.constant 0 : index
    %c0_42 = arith.constant 0 : index
    %44 = vector.load %arg1[%c0_40, %c2, %c0_41, %c0_42] : memref<1x9x64x128xbf16, #tpu.memory_space<vmem>>, vector<1x1x64x128xbf16>
    %45 = vector.shape_cast %44 : vector<1x1x64x128xbf16> to vector<64x128xbf16>
    %c0_43 = arith.constant 0 : index
    %c0_44 = arith.constant 0 : index
    %46 = vector.load %arg5[%c0_43, %c0_44] : memref<128x128xbf16, #tpu.memory_space<vmem>>, vector<128x128xbf16>
    %cst_45 = arith.constant dense<0.000000e+00> : vector<64x128xf32>
    %47 = tpu.matmul %45, %46, %cst_45 {dimension_numbers = #tpu.dot_dimension_numbers<[1], [0], [0], [1], [0, 0, 1, 1], [], []>} : vector<64x128xbf16>, vector<128x128xbf16>, vector<64x128xf32> -> vector<64x128xf32>
    %c0_46 = arith.constant 0 : index
    %c0_47 = arith.constant 0 : index
    %48 = vector.load %arg6[%c0_46, %c0_47] : memref<1x128xf32, #tpu.memory_space<vmem>>, vector<1x128xf32>
    %49 = vector.broadcast %48 : vector<1x128xf32> to vector<64x128xf32>
    %50 = arith.addf %47, %49 : vector<64x128xf32>
    %cst_48 = arith.constant 0.000000e+00 : f32
    %51 = vector.broadcast %cst_48 : f32 to vector<64x128xf32>
    %52 = arith.maximumf %50, %51 : vector<64x128xf32>
    %c2_49 = arith.constant 2 : index
    %c0_50 = arith.constant 0 : index
    %c0_51 = arith.constant 0 : index
    %53 = vector.load %arg2[%c2_49, %c0_50, %c0_51] : memref<9x64x128xbf16, #tpu.memory_space<vmem>>, vector<1x64x128xbf16>
    %54 = vector.shape_cast %53 : vector<1x64x128xbf16> to vector<64x128xbf16>
    %55 = arith.extf %54 : vector<64x128xbf16> to vector<64x128xf32>
    %56 = arith.mulf %52, %55 : vector<64x128xf32>
    %57 = arith.truncf %56 : vector<64x128xf32> to vector<64x128xbf16>
    %c2_52 = arith.constant 2 : index
    %c0_53 = arith.constant 0 : index
    %c0_54 = arith.constant 0 : index
    %58 = vector.load %arg7[%c2_52, %c0_53, %c0_54] : memref<9x128x128xbf16, #tpu.memory_space<vmem>>, vector<1x128x128xbf16>
    %59 = vector.shape_cast %58 : vector<1x128x128xbf16> to vector<128x128xbf16>
    %cst_55 = arith.constant dense<0.000000e+00> : vector<64x128xf32>
    %60 = tpu.matmul %57, %59, %cst_55 {dimension_numbers = #tpu.dot_dimension_numbers<[1], [0], [0], [1], [0, 0, 1, 1], [], []>} : vector<64x128xbf16>, vector<128x128xbf16>, vector<64x128xf32> -> vector<64x128xf32>
    %61 = arith.addf %43, %60 : vector<64x128xf32>
    %c0_56 = arith.constant 0 : index
    %c3 = arith.constant 3 : index
    %c0_57 = arith.constant 0 : index
    %c0_58 = arith.constant 0 : index
    %62 = vector.load %arg1[%c0_56, %c3, %c0_57, %c0_58] : memref<1x9x64x128xbf16, #tpu.memory_space<vmem>>, vector<1x1x64x128xbf16>
    %63 = vector.shape_cast %62 : vector<1x1x64x128xbf16> to vector<64x128xbf16>
    %c0_59 = arith.constant 0 : index
    %c0_60 = arith.constant 0 : index
    %64 = vector.load %arg5[%c0_59, %c0_60] : memref<128x128xbf16, #tpu.memory_space<vmem>>, vector<128x128xbf16>
    %cst_61 = arith.constant dense<0.000000e+00> : vector<64x128xf32>
    %65 = tpu.matmul %63, %64, %cst_61 {dimension_numbers = #tpu.dot_dimension_numbers<[1], [0], [0], [1], [0, 0, 1, 1], [], []>} : vector<64x128xbf16>, vector<128x128xbf16>, vector<64x128xf32> -> vector<64x128xf32>
    %c0_62 = arith.constant 0 : index
    %c0_63 = arith.constant 0 : index
    %66 = vector.load %arg6[%c0_62, %c0_63] : memref<1x128xf32, #tpu.memory_space<vmem>>, vector<1x128xf32>
    %67 = vector.broadcast %66 : vector<1x128xf32> to vector<64x128xf32>
    %68 = arith.addf %65, %67 : vector<64x128xf32>
    %cst_64 = arith.constant 0.000000e+00 : f32
    %69 = vector.broadcast %cst_64 : f32 to vector<64x128xf32>
    %70 = arith.maximumf %68, %69 : vector<64x128xf32>
    %c3_65 = arith.constant 3 : index
    %c0_66 = arith.constant 0 : index
    %c0_67 = arith.constant 0 : index
    %71 = vector.load %arg2[%c3_65, %c0_66, %c0_67] : memref<9x64x128xbf16, #tpu.memory_space<vmem>>, vector<1x64x128xbf16>
    %72 = vector.shape_cast %71 : vector<1x64x128xbf16> to vector<64x128xbf16>
    %73 = arith.extf %72 : vector<64x128xbf16> to vector<64x128xf32>
    %74 = arith.mulf %70, %73 : vector<64x128xf32>
    %75 = arith.truncf %74 : vector<64x128xf32> to vector<64x128xbf16>
    %c3_68 = arith.constant 3 : index
    %c0_69 = arith.constant 0 : index
    %c0_70 = arith.constant 0 : index
    %76 = vector.load %arg7[%c3_68, %c0_69, %c0_70] : memref<9x128x128xbf16, #tpu.memory_space<vmem>>, vector<1x128x128xbf16>
    %77 = vector.shape_cast %76 : vector<1x128x128xbf16> to vector<128x128xbf16>
    %cst_71 = arith.constant dense<0.000000e+00> : vector<64x128xf32>
    %78 = tpu.matmul %75, %77, %cst_71 {dimension_numbers = #tpu.dot_dimension_numbers<[1], [0], [0], [1], [0, 0, 1, 1], [], []>} : vector<64x128xbf16>, vector<128x128xbf16>, vector<64x128xf32> -> vector<64x128xf32>
    %79 = arith.addf %61, %78 : vector<64x128xf32>
    %c0_72 = arith.constant 0 : index
    %c4_73 = arith.constant 4 : index
    %c0_74 = arith.constant 0 : index
    %c0_75 = arith.constant 0 : index
    %80 = vector.load %arg1[%c0_72, %c4_73, %c0_74, %c0_75] : memref<1x9x64x128xbf16, #tpu.memory_space<vmem>>, vector<1x1x64x128xbf16>
    %81 = vector.shape_cast %80 : vector<1x1x64x128xbf16> to vector<64x128xbf16>
    %c0_76 = arith.constant 0 : index
    %c0_77 = arith.constant 0 : index
    %82 = vector.load %arg5[%c0_76, %c0_77] : memref<128x128xbf16, #tpu.memory_space<vmem>>, vector<128x128xbf16>
    %cst_78 = arith.constant dense<0.000000e+00> : vector<64x128xf32>
    %83 = tpu.matmul %81, %82, %cst_78 {dimension_numbers = #tpu.dot_dimension_numbers<[1], [0], [0], [1], [0, 0, 1, 1], [], []>} : vector<64x128xbf16>, vector<128x128xbf16>, vector<64x128xf32> -> vector<64x128xf32>
    %c0_79 = arith.constant 0 : index
    %c0_80 = arith.constant 0 : index
    %84 = vector.load %arg6[%c0_79, %c0_80] : memref<1x128xf32, #tpu.memory_space<vmem>>, vector<1x128xf32>
    %85 = vector.broadcast %84 : vector<1x128xf32> to vector<64x128xf32>
    %86 = arith.addf %83, %85 : vector<64x128xf32>
    %cst_81 = arith.constant 0.000000e+00 : f32
    %87 = vector.broadcast %cst_81 : f32 to vector<64x128xf32>
    %88 = arith.maximumf %86, %87 : vector<64x128xf32>
    %c4_82 = arith.constant 4 : index
    %c0_83 = arith.constant 0 : index
    %c0_84 = arith.constant 0 : index
    %89 = vector.load %arg2[%c4_82, %c0_83, %c0_84] : memref<9x64x128xbf16, #tpu.memory_space<vmem>>, vector<1x64x128xbf16>
    %90 = vector.shape_cast %89 : vector<1x64x128xbf16> to vector<64x128xbf16>
    %91 = arith.extf %90 : vector<64x128xbf16> to vector<64x128xf32>
    %92 = arith.mulf %88, %91 : vector<64x128xf32>
    %93 = arith.truncf %92 : vector<64x128xf32> to vector<64x128xbf16>
    %c4_85 = arith.constant 4 : index
    %c0_86 = arith.constant 0 : index
    %c0_87 = arith.constant 0 : index
    %94 = vector.load %arg7[%c4_85, %c0_86, %c0_87] : memref<9x128x128xbf16, #tpu.memory_space<vmem>>, vector<1x128x128xbf16>
    %95 = vector.shape_cast %94 : vector<1x128x128xbf16> to vector<128x128xbf16>
    %cst_88 = arith.constant dense<0.000000e+00> : vector<64x128xf32>
    %96 = tpu.matmul %93, %95, %cst_88 {dimension_numbers = #tpu.dot_dimension_numbers<[1], [0], [0], [1], [0, 0, 1, 1], [], []>} : vector<64x128xbf16>, vector<128x128xbf16>, vector<64x128xf32> -> vector<64x128xf32>
    %97 = arith.addf %79, %96 : vector<64x128xf32>
    %c0_89 = arith.constant 0 : index
    %c5 = arith.constant 5 : index
    %c0_90 = arith.constant 0 : index
    %c0_91 = arith.constant 0 : index
    %98 = vector.load %arg1[%c0_89, %c5, %c0_90, %c0_91] : memref<1x9x64x128xbf16, #tpu.memory_space<vmem>>, vector<1x1x64x128xbf16>
    %99 = vector.shape_cast %98 : vector<1x1x64x128xbf16> to vector<64x128xbf16>
    %c0_92 = arith.constant 0 : index
    %c0_93 = arith.constant 0 : index
    %100 = vector.load %arg5[%c0_92, %c0_93] : memref<128x128xbf16, #tpu.memory_space<vmem>>, vector<128x128xbf16>
    %cst_94 = arith.constant dense<0.000000e+00> : vector<64x128xf32>
    %101 = tpu.matmul %99, %100, %cst_94 {dimension_numbers = #tpu.dot_dimension_numbers<[1], [0], [0], [1], [0, 0, 1, 1], [], []>} : vector<64x128xbf16>, vector<128x128xbf16>, vector<64x128xf32> -> vector<64x128xf32>
    %c0_95 = arith.constant 0 : index
    %c0_96 = arith.constant 0 : index
    %102 = vector.load %arg6[%c0_95, %c0_96] : memref<1x128xf32, #tpu.memory_space<vmem>>, vector<1x128xf32>
    %103 = vector.broadcast %102 : vector<1x128xf32> to vector<64x128xf32>
    %104 = arith.addf %101, %103 : vector<64x128xf32>
    %cst_97 = arith.constant 0.000000e+00 : f32
    %105 = vector.broadcast %cst_97 : f32 to vector<64x128xf32>
    %106 = arith.maximumf %104, %105 : vector<64x128xf32>
    %c5_98 = arith.constant 5 : index
    %c0_99 = arith.constant 0 : index
    %c0_100 = arith.constant 0 : index
    %107 = vector.load %arg2[%c5_98, %c0_99, %c0_100] : memref<9x64x128xbf16, #tpu.memory_space<vmem>>, vector<1x64x128xbf16>
    %108 = vector.shape_cast %107 : vector<1x64x128xbf16> to vector<64x128xbf16>
    %109 = arith.extf %108 : vector<64x128xbf16> to vector<64x128xf32>
    %110 = arith.mulf %106, %109 : vector<64x128xf32>
    %111 = arith.truncf %110 : vector<64x128xf32> to vector<64x128xbf16>
    %c5_101 = arith.constant 5 : index
    %c0_102 = arith.constant 0 : index
    %c0_103 = arith.constant 0 : index
    %112 = vector.load %arg7[%c5_101, %c0_102, %c0_103] : memref<9x128x128xbf16, #tpu.memory_space<vmem>>, vector<1x128x128xbf16>
    %113 = vector.shape_cast %112 : vector<1x128x128xbf16> to vector<128x128xbf16>
    %cst_104 = arith.constant dense<0.000000e+00> : vector<64x128xf32>
    %114 = tpu.matmul %111, %113, %cst_104 {dimension_numbers = #tpu.dot_dimension_numbers<[1], [0], [0], [1], [0, 0, 1, 1], [], []>} : vector<64x128xbf16>, vector<128x128xbf16>, vector<64x128xf32> -> vector<64x128xf32>
    %115 = arith.addf %97, %114 : vector<64x128xf32>
    %c0_105 = arith.constant 0 : index
    %c6 = arith.constant 6 : index
    %c0_106 = arith.constant 0 : index
    %c0_107 = arith.constant 0 : index
    %116 = vector.load %arg1[%c0_105, %c6, %c0_106, %c0_107] : memref<1x9x64x128xbf16, #tpu.memory_space<vmem>>, vector<1x1x64x128xbf16>
    %117 = vector.shape_cast %116 : vector<1x1x64x128xbf16> to vector<64x128xbf16>
    %c0_108 = arith.constant 0 : index
    %c0_109 = arith.constant 0 : index
    %118 = vector.load %arg5[%c0_108, %c0_109] : memref<128x128xbf16, #tpu.memory_space<vmem>>, vector<128x128xbf16>
    %cst_110 = arith.constant dense<0.000000e+00> : vector<64x128xf32>
    %119 = tpu.matmul %117, %118, %cst_110 {dimension_numbers = #tpu.dot_dimension_numbers<[1], [0], [0], [1], [0, 0, 1, 1], [], []>} : vector<64x128xbf16>, vector<128x128xbf16>, vector<64x128xf32> -> vector<64x128xf32>
    %c0_111 = arith.constant 0 : index
    %c0_112 = arith.constant 0 : index
    %120 = vector.load %arg6[%c0_111, %c0_112] : memref<1x128xf32, #tpu.memory_space<vmem>>, vector<1x128xf32>
    %121 = vector.broadcast %120 : vector<1x128xf32> to vector<64x128xf32>
    %122 = arith.addf %119, %121 : vector<64x128xf32>
    %cst_113 = arith.constant 0.000000e+00 : f32
    %123 = vector.broadcast %cst_113 : f32 to vector<64x128xf32>
    %124 = arith.maximumf %122, %123 : vector<64x128xf32>
    %c6_114 = arith.constant 6 : index
    %c0_115 = arith.constant 0 : index
    %c0_116 = arith.constant 0 : index
    %125 = vector.load %arg2[%c6_114, %c0_115, %c0_116] : memref<9x64x128xbf16, #tpu.memory_space<vmem>>, vector<1x64x128xbf16>
    %126 = vector.shape_cast %125 : vector<1x64x128xbf16> to vector<64x128xbf16>
    %127 = arith.extf %126 : vector<64x128xbf16> to vector<64x128xf32>
    %128 = arith.mulf %124, %127 : vector<64x128xf32>
    %129 = arith.truncf %128 : vector<64x128xf32> to vector<64x128xbf16>
    %c6_117 = arith.constant 6 : index
    %c0_118 = arith.constant 0 : index
    %c0_119 = arith.constant 0 : index
    %130 = vector.load %arg7[%c6_117, %c0_118, %c0_119] : memref<9x128x128xbf16, #tpu.memory_space<vmem>>, vector<1x128x128xbf16>
    %131 = vector.shape_cast %130 : vector<1x128x128xbf16> to vector<128x128xbf16>
    %cst_120 = arith.constant dense<0.000000e+00> : vector<64x128xf32>
    %132 = tpu.matmul %129, %131, %cst_120 {dimension_numbers = #tpu.dot_dimension_numbers<[1], [0], [0], [1], [0, 0, 1, 1], [], []>} : vector<64x128xbf16>, vector<128x128xbf16>, vector<64x128xf32> -> vector<64x128xf32>
    %133 = arith.addf %115, %132 : vector<64x128xf32>
    %c0_121 = arith.constant 0 : index
    %c7 = arith.constant 7 : index
    %c0_122 = arith.constant 0 : index
    %c0_123 = arith.constant 0 : index
    %134 = vector.load %arg1[%c0_121, %c7, %c0_122, %c0_123] : memref<1x9x64x128xbf16, #tpu.memory_space<vmem>>, vector<1x1x64x128xbf16>
    %135 = vector.shape_cast %134 : vector<1x1x64x128xbf16> to vector<64x128xbf16>
    %c0_124 = arith.constant 0 : index
    %c0_125 = arith.constant 0 : index
    %136 = vector.load %arg5[%c0_124, %c0_125] : memref<128x128xbf16, #tpu.memory_space<vmem>>, vector<128x128xbf16>
    %cst_126 = arith.constant dense<0.000000e+00> : vector<64x128xf32>
    %137 = tpu.matmul %135, %136, %cst_126 {dimension_numbers = #tpu.dot_dimension_numbers<[1], [0], [0], [1], [0, 0, 1, 1], [], []>} : vector<64x128xbf16>, vector<128x128xbf16>, vector<64x128xf32> -> vector<64x128xf32>
    %c0_127 = arith.constant 0 : index
    %c0_128 = arith.constant 0 : index
    %138 = vector.load %arg6[%c0_127, %c0_128] : memref<1x128xf32, #tpu.memory_space<vmem>>, vector<1x128xf32>
    %139 = vector.broadcast %138 : vector<1x128xf32> to vector<64x128xf32>
    %140 = arith.addf %137, %139 : vector<64x128xf32>
    %cst_129 = arith.constant 0.000000e+00 : f32
    %141 = vector.broadcast %cst_129 : f32 to vector<64x128xf32>
    %142 = arith.maximumf %140, %141 : vector<64x128xf32>
    %c7_130 = arith.constant 7 : index
    %c0_131 = arith.constant 0 : index
    %c0_132 = arith.constant 0 : index
    %143 = vector.load %arg2[%c7_130, %c0_131, %c0_132] : memref<9x64x128xbf16, #tpu.memory_space<vmem>>, vector<1x64x128xbf16>
    %144 = vector.shape_cast %143 : vector<1x64x128xbf16> to vector<64x128xbf16>
    %145 = arith.extf %144 : vector<64x128xbf16> to vector<64x128xf32>
    %146 = arith.mulf %142, %145 : vector<64x128xf32>
    %147 = arith.truncf %146 : vector<64x128xf32> to vector<64x128xbf16>
    %c7_133 = arith.constant 7 : index
    %c0_134 = arith.constant 0 : index
    %c0_135 = arith.constant 0 : index
    %148 = vector.load %arg7[%c7_133, %c0_134, %c0_135] : memref<9x128x128xbf16, #tpu.memory_space<vmem>>, vector<1x128x128xbf16>
    %149 = vector.shape_cast %148 : vector<1x128x128xbf16> to vector<128x128xbf16>
    %cst_136 = arith.constant dense<0.000000e+00> : vector<64x128xf32>
    %150 = tpu.matmul %147, %149, %cst_136 {dimension_numbers = #tpu.dot_dimension_numbers<[1], [0], [0], [1], [0, 0, 1, 1], [], []>} : vector<64x128xbf16>, vector<128x128xbf16>, vector<64x128xf32> -> vector<64x128xf32>
    %151 = arith.addf %133, %150 : vector<64x128xf32>
    %c0_137 = arith.constant 0 : index
    %c8 = arith.constant 8 : index
    %c0_138 = arith.constant 0 : index
    %c0_139 = arith.constant 0 : index
    %152 = vector.load %arg1[%c0_137, %c8, %c0_138, %c0_139] : memref<1x9x64x128xbf16, #tpu.memory_space<vmem>>, vector<1x1x64x128xbf16>
    %153 = vector.shape_cast %152 : vector<1x1x64x128xbf16> to vector<64x128xbf16>
    %c0_140 = arith.constant 0 : index
    %c0_141 = arith.constant 0 : index
    %154 = vector.load %arg5[%c0_140, %c0_141] : memref<128x128xbf16, #tpu.memory_space<vmem>>, vector<128x128xbf16>
    %cst_142 = arith.constant dense<0.000000e+00> : vector<64x128xf32>
    %155 = tpu.matmul %153, %154, %cst_142 {dimension_numbers = #tpu.dot_dimension_numbers<[1], [0], [0], [1], [0, 0, 1, 1], [], []>} : vector<64x128xbf16>, vector<128x128xbf16>, vector<64x128xf32> -> vector<64x128xf32>
    %c0_143 = arith.constant 0 : index
    %c0_144 = arith.constant 0 : index
    %156 = vector.load %arg6[%c0_143, %c0_144] : memref<1x128xf32, #tpu.memory_space<vmem>>, vector<1x128xf32>
    %157 = vector.broadcast %156 : vector<1x128xf32> to vector<64x128xf32>
    %158 = arith.addf %155, %157 : vector<64x128xf32>
    %cst_145 = arith.constant 0.000000e+00 : f32
    %159 = vector.broadcast %cst_145 : f32 to vector<64x128xf32>
    %160 = arith.maximumf %158, %159 : vector<64x128xf32>
    %c8_146 = arith.constant 8 : index
    %c0_147 = arith.constant 0 : index
    %c0_148 = arith.constant 0 : index
    %161 = vector.load %arg2[%c8_146, %c0_147, %c0_148] : memref<9x64x128xbf16, #tpu.memory_space<vmem>>, vector<1x64x128xbf16>
    %162 = vector.shape_cast %161 : vector<1x64x128xbf16> to vector<64x128xbf16>
    %163 = arith.extf %162 : vector<64x128xbf16> to vector<64x128xf32>
    %164 = arith.mulf %160, %163 : vector<64x128xf32>
    %165 = arith.truncf %164 : vector<64x128xf32> to vector<64x128xbf16>
    %c8_149 = arith.constant 8 : index
    %c0_150 = arith.constant 0 : index
    %c0_151 = arith.constant 0 : index
    %166 = vector.load %arg7[%c8_149, %c0_150, %c0_151] : memref<9x128x128xbf16, #tpu.memory_space<vmem>>, vector<1x128x128xbf16>
    %167 = vector.shape_cast %166 : vector<1x128x128xbf16> to vector<128x128xbf16>
    %cst_152 = arith.constant dense<0.000000e+00> : vector<64x128xf32>
    %168 = tpu.matmul %165, %167, %cst_152 {dimension_numbers = #tpu.dot_dimension_numbers<[1], [0], [0], [1], [0, 0, 1, 1], [], []>} : vector<64x128xbf16>, vector<128x128xbf16>, vector<64x128xf32> -> vector<64x128xf32>
    %169 = arith.addf %151, %168 : vector<64x128xf32>
    %c0_153 = arith.constant 0 : index
    %c0_154 = arith.constant 0 : index
    %170 = vector.load %arg8[%c0_153, %c0_154] : memref<1x128xf32, #tpu.memory_space<vmem>>, vector<1x128xf32>
    %171 = vector.broadcast %170 : vector<1x128xf32> to vector<64x128xf32>
    %172 = arith.addf %169, %171 : vector<64x128xf32>
    %cst_155 = arith.constant 0.000000e+00 : f32
    %173 = vector.broadcast %cst_155 : f32 to vector<64x128xf32>
    %174 = arith.maximumf %172, %173 : vector<64x128xf32>
    %175 = arith.truncf %174 : vector<64x128xf32> to vector<64x128xbf16>
    %c0_156 = arith.constant 0 : index
    %c0_157 = arith.constant 0 : index
    %176 = vector.load %arg9[%c0_156, %c0_157] : memref<128x128xbf16, #tpu.memory_space<vmem>>, vector<128x128xbf16>
    %cst_158 = arith.constant dense<0.000000e+00> : vector<64x128xf32>
    %177 = tpu.matmul %175, %176, %cst_158 {dimension_numbers = #tpu.dot_dimension_numbers<[1], [0], [0], [1], [0, 0, 1, 1], [], []>} : vector<64x128xbf16>, vector<128x128xbf16>, vector<64x128xf32> -> vector<64x128xf32>
    %c0_159 = arith.constant 0 : index
    %c0_160 = arith.constant 0 : index
    %178 = vector.load %arg10[%c0_159, %c0_160] : memref<1x128xf32, #tpu.memory_space<vmem>>, vector<1x128xf32>
    %179 = vector.broadcast %178 : vector<1x128xf32> to vector<64x128xf32>
    %180 = arith.addf %177, %179 : vector<64x128xf32>
    %181 = arith.addf %180, %6 : vector<64x128xf32>
    %cst_161 = arith.constant 0.000000e+00 : f32
    %182 = vector.broadcast %cst_161 : f32 to vector<64x128xf32>
    %183 = arith.maximumf %181, %182 : vector<64x128xf32>
    %cst_162 = arith.constant dense<0.000000e+00> : vector<128xf32>
    %184 = vector.multi_reduction <add>, %183, %cst_162 [0] : vector<64x128xf32> to vector<128xf32>
    %185 = vector.shape_cast %184 : vector<128xf32> to vector<1x128xf32>
    %cst_163 = arith.constant 1.562500e-02 : f32
    %186 = vector.broadcast %cst_163 : f32 to vector<1x128xf32>
    %187 = arith.mulf %185, %186 : vector<1x128xf32>
    %c0_164 = arith.constant 0 : index
    %c0_165 = arith.constant 0 : index
    %c0_166 = arith.constant 0 : index
    %188 = vector.load %arg11[%c0_164, %c0_165, %c0_166] : memref<1x1x128xf32, #tpu.memory_space<vmem>>, vector<1x1x128xf32>
    %189 = vector.shape_cast %188 : vector<1x1x128xf32> to vector<1x128xf32>
    %190 = vector.shape_cast %187 : vector<1x128xf32> to vector<1x1x128xf32>
    tpu.vector_store %arg11[%c0_164, %c0_165, %c0_166], %190 {strides = array<i32>} : memref<1x1x128xf32, #tpu.memory_space<vmem>>, vector<1x1x128xf32>,
    return
  }
  func.func @transform_0(%arg0: i32) -> (i32, i32, i32, i32) {
    %c0_i32 = arith.constant 0 : i32
    %c0_i32_0 = arith.constant 0 : i32
    %c0_i32_1 = arith.constant 0 : i32
    %c0_i32_2 = arith.constant 0 : i32
    return %arg0, %c0_i32, %c0_i32_0, %c0_i32_1 : i32, i32, i32, i32
  }
  func.func @transform_1(%arg0: i32) -> (i32, i32, i32) {
    %c0_i32 = arith.constant 0 : i32
    %c0_i32_0 = arith.constant 0 : i32
    %c0_i32_1 = arith.constant 0 : i32
    %c0_i32_2 = arith.constant 0 : i32
    return %c0_i32, %c0_i32_0, %c0_i32_1 : i32, i32, i32
  }
  func.func @transform_2(%arg0: i32) -> (i32, i32) {
    %c0_i32 = arith.constant 0 : i32
    %c0_i32_0 = arith.constant 0 : i32
    %c0_i32_1 = arith.constant 0 : i32
    return %c0_i32, %c0_i32_0 : i32, i32
  }
  func.func @transform_3(%arg0: i32) -> (i32, i32) {
    %c0_i32 = arith.constant 0 : i32
    %c0_i32_0 = arith.constant 0 : i32
    %c0_i32_1 = arith.constant 0 : i32
    return %c0_i32, %c0_i32_0 : i32, i32
  }
  func.func @transform_4(%arg0: i32) -> (i32, i32) {
    %c0_i32 = arith.constant 0 : i32
    %c0_i32_0 = arith.constant 0 : i32
    %c0_i32_1 = arith.constant 0 : i32
    return %c0_i32, %c0_i32_0 : i32, i32
  }
  func.func @transform_5(%arg0: i32) -> (i32, i32) {
    %c0_i32 = arith.constant 0 : i32
    %c0_i32_0 = arith.constant 0 : i32
    %c0_i32_1 = arith.constant 0 : i32
    return %c0_i32, %c0_i32_0 : i32, i32
  }
  func.func @transform_6(%arg0: i32) -> (i32, i32, i32) {
    %c0_i32 = arith.constant 0 : i32
    %c0_i32_0 = arith.constant 0 : i32
    %c0_i32_1 = arith.constant 0 : i32
    %c0_i32_2 = arith.constant 0 : i32
    return %c0_i32, %c0_i32_0, %c0_i32_1 : i32, i32, i32
  }
  func.func @transform_7(%arg0: i32) -> (i32, i32) {
    %c0_i32 = arith.constant 0 : i32
    %c0_i32_0 = arith.constant 0 : i32
    %c0_i32_1 = arith.constant 0 : i32
    return %c0_i32, %c0_i32_0 : i32, i32
  }
  func.func @transform_8(%arg0: i32) -> (i32, i32) {
    %c0_i32 = arith.constant 0 : i32
    %c0_i32_0 = arith.constant 0 : i32
    %c0_i32_1 = arith.constant 0 : i32
    return %c0_i32, %c0_i32_0 : i32, i32
  }
  func.func @transform_9(%arg0: i32) -> (i32, i32) {
    %c0_i32 = arith.constant 0 : i32
    %c0_i32_0 = arith.constant 0 : i32
    %c0_i32_1 = arith.constant 0 : i32
    return %c0_i32, %c0_i32_0 : i32, i32
  }
  func.func @transform_10(%arg0: i32) -> (i32, i32, i32) {
    %c0_i32 = arith.constant 0 : i32
    %c0_i32_0 = arith.constant 0 : i32
    %c0_i32_1 = arith.constant 0 : i32
    return %arg0, %c0_i32, %c0_i32_0 : i32, i32, i32
  }
}

</mosaic_0001>

<bundles_post_ra>
// kernel: geo_embedding_forward.2
= control target key start
LH: loop header
LB: loop body
LE: loop exit
PB: predicated region body
PF: predicated region fallthrough
CT: control target
= control target key end

     0   :  { %s1363_s12 = smov 0   ;;  %s1521_s0 = inlined_call_operand.vmem [shape: bf16[512,256], index: 0, kind: input, shape index: {}]   ;;  %s1522_s1 = inlined_call_operand.vmem [shape: bf16[256,128], index: 1, kind: input, shape index: {}]   ;;  %s1523_s2 = inlined_call_operand.vmem [shape: f32[1,128], index: 2, kind: input, shape index: {}]   ;;  %s1524_s3 = inlined_call_operand.vmem [shape: bf16[512,128], index: 3, kind: output, shape index: {}]  }
   0x1 LB: > { %s914_s13 = sadd.s32 4294967295, %s1341_s12   ;;  %p918_p0 = scmp.ge.s32.totalorder %s1341_s12, 1  ;;  %s1341_s12 = sphi %s1363_s12, %s13_s12  }
   0x2   : > { %p139_p1 = scmp.lt.s32.totalorder %s1341_s12, 3 }
   0x4   : > { %p140_p2 = pnand %p918_p0, %p139_p1 }
   0x5   : > { %v1271_v0 = vld [vmem:[%s1522_s1 + $0x40] sm:$0xff] (!%p140_p2)   ;;  %s919_s16 = sshll.u32 (!%p140_p2), %s914_s13, 5  ;;  %v1273_v2 = vld [vmem:[%s1522_s1 + $0x48] sm:$0xff] (!%p140_p2)   ;;  %v1275_v4 = vld [vmem:[%s1522_s1 + $0x50] sm:$0xff] (!%p140_p2)  }
   0x6   : > { %143 = sbr.rel (%p140_p2) target bundleno = 319 (0x13f), region = 32  ;;  %v1272_v1 = vld [vmem:[%s1522_s1] sm:$0xff] (!%p140_p2)   ;;  %1135 = vmatprep.subr.bf16.mxu0 (!%p140_p2), %v1271_v0  ;;  %1247 = vmatprep.subr.bf16.mxu1 (!%p140_p2), %v1271_v0  ;;  %v1274_v3 = vld [vmem:[%s1522_s1 + $0x8] sm:$0xff] (!%p140_p2)   ;;  %p165_p3 = scmp.lt.s32.totalorder (!%p140_p2), %s919_s16, 63  ;;  %v1276_v5 = vld [vmem:[%s1522_s1 + $0x10] sm:$0xff] (!%p140_p2)  }
   0x7   : > { %1136 = vmatpush3.bf16.msra.mxu0 (!%p140_p2), %v1272_v1  ;;  %1255 = vmatpush3.bf16.msra.mxu1 (!%p140_p2), %v1272_v1  ;;  %v1277_v6 = vld [vmem:[%s1522_s1 + $0x58] sm:$0xff] (!%p140_p2)   ;;  %v1279_v8 = vld [vmem:[%s1522_s1 + $0x60] sm:$0xff] (!%p140_p2)   ;;  %v1281_v10 = vld [vmem:[%s1522_s1 + $0x68] sm:$0xff] (!%p140_p2)  }
   0x8   : > { %1137 = vmatprep.subr.bf16.mxu0 (!%p140_p2), %v1273_v2  ;;  %1248 = vmatprep.subr.bf16.mxu1 (!%p140_p2), %v1273_v2  ;;  %v1278_v7 = vld [vmem:[%s1522_s1 + $0x18] sm:$0xff] (!%p140_p2)   ;;  %v1280_v9 = vld [vmem:[%s1522_s1 + $0x20] sm:$0xff] (!%p140_p2)   ;;  %v1282_v13 = vld [vmem:[%s1522_s1 + $0x28] sm:$0xff] (!%p140_p2)  }
   0x9   : > { %v1283_v14 = vld [vmem:[%s1522_s1 + $0x70] sm:$0xff] (!%p140_p2)   ;;  %v1285_v16 = vld [vmem:[%s1522_s1 + $0x78] sm:$0xff] (!%p140_p2)   ;;  %v1462_v50 = vld [vmem:[%s1523_s2] ss:$0 sm:$0xff] (!%p140_p2) }
   0xa   : > { %v1284_v15 = vld [vmem:[%s1522_s1 + $0x30] sm:$0xff] (!%p140_p2)   ;;  %v1286_v17 = vld [vmem:[%s1522_s1 + $0x38] sm:$0xff] (!%p140_p2)  }
   0xb   : > { %1138 = vmatpush3.bf16.msra.mxu0 (!%p140_p2), %v1274_v3  ;;  %1256 = vmatpush3.bf16.msra.mxu1 (!%p140_p2), %v1274_v3 }
   0xc   : > { %1139 = vmatprep.subr.bf16.mxu0 (!%p140_p2), %v1275_v4  ;;  %1249 = vmatprep.subr.bf16.mxu1 (!%p140_p2), %v1275_v4 }
   0xd   : > { %s1526_s16 = smov (!%p165_p3, %s919_s16), 63 }
   0xe   : > { %s1007_s4 = sshll.u32 %s1526_s16, 3  ;;  %s923_s28 = sshll.u32 %s1526_s16, 2 }
   0xf   : > { %1140 = vmatpush3.bf16.msra.mxu0 %v1276_v5  ;;  %1257 = vmatpush3.bf16.msra.mxu1 %v1276_v5  ;;  %s1404_s9 = scalar_lea.vmem %s1521_s0, %s1007_s4  ;;  %s1472_s4 = scalar_lea.vmem %s1524_s3, %s923_s28 }
  0x10   : > { %1141 = vmatprep.subr.bf16.mxu0 %v1277_v6  ;;  %1250 = vmatprep.subr.bf16.mxu1 %v1277_v6  ;;  %v1289_v11 = vld [vmem:[%s1404_s9 + $0x4] ss:$8 sps:$4 sm:$0xff]   ;;  %v1287_v18 = vld [vmem:[%s1404_s9] ss:$8 sps:$4 sm:$0xff]   ;;  %v1293_v20 = vld [vmem:[%s1404_s9 + $0x14] ss:$8 sps:$4 sm:$0xff]  }
  0x11   : > { %v1292_v12 = vld [vmem:[%s1404_s9 + $0x84] ss:$8 sps:$4 sm:$0xff]   ;;  %537 = vmatprep.mubr.bf16.mxu0 %v1289_v11  ;;  %v1290_v19 = vld [vmem:[%s1404_s9 + $0x80] ss:$8 sps:$4 sm:$0xff]   ;;  %v1295_v21 = vld [vmem:[%s1404_s9 + $0x94] ss:$8 sps:$4 sm:$0xff]  }
  0x12   : > { %601 = vmatprep.mubr.bf16.mxu1 %v1292_v12  ;;  %v1297_v22 = vld [vmem:[%s1404_s9 + $0x10] ss:$8 sps:$4 sm:$0xff]   ;;  %v1299_v24 = vld [vmem:[%s1404_s9 + $0x24] ss:$8 sps:$4 sm:$0xff]   ;;  %v1303_v26 = vld [vmem:[%s1404_s9 + $0x20] ss:$8 sps:$4 sm:$0xff]  }
  0x13   : > { %1142 = vmatpush3.bf16.msra.mxu0 %v1278_v7  ;;  %1258 = vmatpush3.bf16.msra.mxu1 %v1278_v7  ;;  %v1298_v23 = vld [vmem:[%s1404_s9 + $0x90] ss:$8 sps:$4 sm:$0xff]   ;;  %v1301_v25 = vld [vmem:[%s1404_s9 + $0xa4] ss:$8 sps:$4 sm:$0xff]   ;;  %v1304_v27 = vld [vmem:[%s1404_s9 + $0xa0] ss:$8 sps:$4 sm:$0xff]  }
  0x14   : > { %1143 = vmatprep.subr.bf16.mxu0 %v1279_v8  ;;  %1251 = vmatprep.subr.bf16.mxu1 %v1279_v8  ;;  %v1305_v28 = vld [vmem:[%s1404_s9 + $0x34] ss:$8 sps:$4 sm:$0xff]   ;;  %v1309_v30 = vld [vmem:[%s1404_s9 + $0x30] ss:$8 sps:$4 sm:$0xff]   ;;  %v1311_v32 = vld [vmem:[%s1404_s9 + $0x44] ss:$8 sps:$4 sm:$0xff]  }
  0x15   : > { %v1307_v29 = vld [vmem:[%s1404_s9 + $0xb4] ss:$8 sps:$4 sm:$0xff]   ;;  %v1310_v31 = vld [vmem:[%s1404_s9 + $0xb0] ss:$8 sps:$4 sm:$0xff]   ;;  %v1313_v33 = vld [vmem:[%s1404_s9 + $0xc4] ss:$8 sps:$4 sm:$0xff]  }
  0x16   : > { %v1315_v34 = vld [vmem:[%s1404_s9 + $0x40] ss:$8 sps:$4 sm:$0xff]   ;;  %v1317_v36 = vld [vmem:[%s1404_s9 + $0x54] ss:$8 sps:$4 sm:$0xff]   ;;  %v1321_v38 = vld [vmem:[%s1404_s9 + $0x50] ss:$8 sps:$4 sm:$0xff]  }
  0x17   : > { %1144 = vmatpush3.bf16.msra.mxu0 %v1280_v9  ;;  %1259 = vmatpush3.bf16.msra.mxu1 %v1280_v9  ;;  %v1316_v35 = vld [vmem:[%s1404_s9 + $0xc0] ss:$8 sps:$4 sm:$0xff]   ;;  %v1319_v37 = vld [vmem:[%s1404_s9 + $0xd4] ss:$8 sps:$4 sm:$0xff]   ;;  %v1322_v39 = vld [vmem:[%s1404_s9 + $0xd0] ss:$8 sps:$4 sm:$0xff]  }
  0x18   : > { %1145 = vmatprep.subr.bf16.mxu0 %v1281_v10  ;;  %1252 = vmatprep.subr.bf16.mxu1 %v1281_v10  ;;  %v1323_v40 = vld [vmem:[%s1404_s9 + $0x64] ss:$8 sps:$4 sm:$0xff]   ;;  %v1327_v42 = vld [vmem:[%s1404_s9 + $0x60] ss:$8 sps:$4 sm:$0xff]   ;;  %v1329_v44 = vld [vmem:[%s1404_s9 + $0x74] ss:$8 sps:$4 sm:$0xff]  }
  0x19   : > { %v1325_v41 = vld [vmem:[%s1404_s9 + $0xe4] ss:$8 sps:$4 sm:$0xff]   ;;  %v1328_v43 = vld [vmem:[%s1404_s9 + $0xe0] ss:$8 sps:$4 sm:$0xff]   ;;  %v1331_v45 = vld [vmem:[%s1404_s9 + $0xf4] ss:$8 sps:$4 sm:$0xff]  }
  0x1a   : > { %v1333_v46 = vld [vmem:[%s1404_s9 + $0x70] ss:$8 sps:$4 sm:$0xff]  }
  0x1b   : > { %1146 = vmatpush3.bf16.msra.mxu0 %v1282_v13  ;;  %1260 = vmatpush3.bf16.msra.mxu1 %v1282_v13  ;;  %v1334_v47 = vld [vmem:[%s1404_s9 + $0xf0] ss:$8 sps:$4 sm:$0xff]  }
  0x1c   : > { %1147 = vmatprep.subr.bf16.mxu0 %v1283_v14  ;;  %1253 = vmatprep.subr.bf16.mxu1 %v1283_v14 }
  0x1f   : > { %1148 = vmatpush3.bf16.msra.mxu0 %v1284_v15  ;;  %1261 = vmatpush3.bf16.msra.mxu1 %v1284_v15 }
  0x20   : > { %1149 = vmatprep.subr.bf16.mxu0 %v1285_v16  ;;  %1254 = vmatprep.subr.bf16.mxu1 %v1285_v16 }
  0x23   : > { %1150 = vmatpush3.bf16.msra.mxu0 %v1286_v17  ;;  %1262 = vmatpush3.bf16.msra.mxu1 %v1286_v17 }
  0x26   : > { %538 = vmatmul.mubr.bf16.vlgmr.msra.gmra.mrb[0].mxu0 %v1287_v18  ;;  %602 = vmatmul.mubr.bf16.vlgmr.msra.gmra.mrb[0].mxu1 %v1290_v19 }
  0x27   : > { %545 = vmatprep.mubr.bf16.mxu0 %v1293_v20  ;;  %609 = vmatprep.mubr.bf16.mxu1 %v1295_v21 }
  0x2e   : > { %546 = vmatmul.mubr.bf16.gmra.mrb[4].mxu0 %v1297_v22  ;;  %610 = vmatmul.mubr.bf16.gmra.mrb[4].mxu1 %v1298_v23 }
  0x2f   : > { %553 = vmatprep.mubr.bf16.mxu0 %v1299_v24  ;;  %617 = vmatprep.mubr.bf16.mxu1 %v1301_v25 }
  0x36   : > { %554 = vmatmul.mubr.bf16.gmra.mrb[8].mxu0 %v1303_v26  ;;  %618 = vmatmul.mubr.bf16.gmra.mrb[8].mxu1 %v1304_v27 }
  0x37   : > { %561 = vmatprep.mubr.bf16.mxu0 %v1305_v28  ;;  %625 = vmatprep.mubr.bf16.mxu1 %v1307_v29 }
  0x3e   : > { %562 = vmatmul.mubr.bf16.gmra.mrb[12].mxu0 %v1309_v30  ;;  %626 = vmatmul.mubr.bf16.gmra.mrb[12].mxu1 %v1310_v31 }
  0x3f   : > { %569 = vmatprep.mubr.bf16.mxu0 %v1311_v32  ;;  %633 = vmatprep.mubr.bf16.mxu1 %v1313_v33 }
  0x46   : > { %570 = vmatmul.mubr.bf16.gmra.mrb[16].mxu0 %v1315_v34  ;;  %634 = vmatmul.mubr.bf16.gmra.mrb[16].mxu1 %v1316_v35 }
  0x47   : > { %577 = vmatprep.mubr.bf16.mxu0 %v1317_v36  ;;  %641 = vmatprep.mubr.bf16.mxu1 %v1319_v37 }
  0x4e   : > { %578 = vmatmul.mubr.bf16.gmra.mrb[20].mxu0 %v1321_v38  ;;  %642 = vmatmul.mubr.bf16.gmra.mrb[20].mxu1 %v1322_v39 }
  0x4f   : > { %585 = vmatprep.mubr.bf16.mxu0 %v1323_v40  ;;  %649 = vmatprep.mubr.bf16.mxu1 %v1325_v41 }
  0x56   : > { %586 = vmatmul.mubr.bf16.gmra.mrb[24].mxu0 %v1327_v42  ;;  %650 = vmatmul.mubr.bf16.gmra.mrb[24].mxu1 %v1328_v43 }
  0x57   : > { %593 = vmatprep.mubr.bf16.mxu0 %v1329_v44  ;;  %657 = vmatprep.mubr.bf16.mxu1 %v1331_v45 }
  0x5e   : > { %594 = vmatmul.mubr.bf16.gmra.mrb[28].mxu0 %v1333_v46  ;;  %658 = vmatmul.mubr.bf16.gmra.mrb[28].mxu1 %v1334_v47 }
  0xf9   : > { %v1151_v48 = vpop.f32.mrb[0].mxu0  ;;  %v1199_v49 = vpop.f32.mrb[0].mxu1 }
  0xfa   : > { %v1152_v51 = vpop.f32.mrb[1].mxu0  ;;  %v1200_v52 = vpop.f32.mrb[1].mxu1 }
  0xfb   : > { %v1153_v53 = vadd.f32 %v1152_v51, %v1151_v48  ;;  %v1201_v54 = vadd.f32 %v1200_v52, %v1199_v49  ;;  %v1154_v55 = vpop.f32.mrb[2].mxu0  ;;  %v1202_v56 = vpop.f32.mrb[2].mxu1 }
  0xfc   : > { %v1155_v57 = vpop.f32.mrb[3].mxu0  ;;  %v1203_v58 = vpop.f32.mrb[3].mxu1 }
  0xfd   : > { %v540_v59 = vadd.f32 %v1153_v53, %v1462_v50  ;;  %v604_v60 = vadd.f32 %v1201_v54, %v1462_v50  ;;  %v1156_v61 = vadd.f32 %v1155_v57, %v1154_v55  ;;  %v1204_v62 = vadd.f32 %v1203_v58, %v1202_v56 }
  0xff   : > { %v543_v63 = vadd.f32 %v1156_v61, %v1462_v50  ;;  %v607_v0 = vadd.f32 %v1204_v62, %v1462_v50  ;;  %v666_v1 = vmax.f32 %v540_v59, 0.0  ;;  %v682_v2 = vmax.f32 %v604_v60, 0.0 }
 0x101   : > { %v667_v3 = vmax.f32 %v543_v63, 0.0  ;;  %v683_v4 = vmax.f32 %v607_v0, 0.0  ;;  %v1157_v5 = vpop.f32.mrb[4].mxu0  ;;  %v1205_v6 = vpop.f32.mrb[4].mxu1 }
 0x102   : > { %v1158_v7 = vpop.f32.mrb[5].mxu0  ;;  %v1206_v8 = vpop.f32.mrb[5].mxu1 }
 0x103   : > { %v1043_v9 = vpack.c.bf16 %v667_v3, %v666_v1  ;;  %v1083_v10 = vpack.c.bf16 %v683_v4, %v682_v2  ;;  %v1159_v11 = vadd.f32 %v1158_v7, %v1157_v5  ;;  %v1207_v12 = vadd.f32 %v1206_v8, %v1205_v6  ;;  %v1160_v13 = vpop.f32.mrb[6].mxu0  ;;  %v1208_v14 = vpop.f32.mrb[6].mxu1 }
 0x104   : > { %v1161_v15 = vpop.f32.mrb[7].mxu0  ;;  %v1209_v16 = vpop.f32.mrb[7].mxu1 }
 0x105   : > { %1044 = vst [vmem:[%s1472_s4] sm:$0xff] %v1043_v9   ;;  %1127 = vst [vmem:[%s1472_s4 + $0x40] sm:$0xff] %v1083_v10   ;;  %v548_v17 = vadd.f32 %v1159_v11, %v1462_v50  ;;  %v612_v18 = vadd.f32 %v1207_v12, %v1462_v50  ;;  %v1162_v19 = vadd.f32 %v1161_v15, %v1160_v13 }
 0x106   : > { %v1210_v20 = vadd.f32 %v1209_v16, %v1208_v14 }
 0x107   : > { %v551_v21 = vadd.f32 %v1162_v19, %v1462_v50  ;;  %v668_v23 = vmax.f32 %v548_v17, 0.0  ;;  %v684_v24 = vmax.f32 %v612_v18, 0.0 }
 0x108   : > { %v615_v22 = vadd.f32 %v1210_v20, %v1462_v50 }
 0x109   : > { %v669_v25 = vmax.f32 %v551_v21, 0.0  ;;  %v1163_v27 = vpop.f32.mrb[8].mxu0  ;;  %v1211_v28 = vpop.f32.mrb[8].mxu1 }
 0x10a   : > { %v685_v26 = vmax.f32 %v615_v22, 0.0  ;;  %v1164_v29 = vpop.f32.mrb[9].mxu0  ;;  %v1212_v30 = vpop.f32.mrb[9].mxu1 }
 0x10b   : > { %v1048_v31 = vpack.c.bf16 %v669_v25, %v668_v23  ;;  %v1165_v33 = vadd.f32 %v1164_v29, %v1163_v27  ;;  %v1213_v34 = vadd.f32 %v1212_v30, %v1211_v28  ;;  %v1166_v35 = vpop.f32.mrb[10].mxu0  ;;  %v1214_v36 = vpop.f32.mrb[10].mxu1 }
 0x10c   : > { %v1088_v32 = vpack.c.bf16 %v685_v26, %v684_v24  ;;  %v1167_v37 = vpop.f32.mrb[11].mxu0  ;;  %v1215_v38 = vpop.f32.mrb[11].mxu1 }
 0x10d   : > { %1120 = vst [vmem:[%s1472_s4 + $0x8] sm:$0xff] %v1048_v31   ;;  %v556_v39 = vadd.f32 %v1165_v33, %v1462_v50  ;;  %v620_v40 = vadd.f32 %v1213_v34, %v1462_v50  ;;  %v1168_v41 = vadd.f32 %v1167_v37, %v1166_v35  ;;  %v1216_v42 = vadd.f32 %v1215_v38, %v1214_v36 }
 0x10e   : > { %1128 = vst [vmem:[%s1472_s4 + $0x48] sm:$0xff] %v1088_v32  }
 0x10f   : > { %v559_v43 = vadd.f32 %v1168_v41, %v1462_v50  ;;  %v623_v44 = vadd.f32 %v1216_v42, %v1462_v50  ;;  %v670_v45 = vmax.f32 %v556_v39, 0.0  ;;  %v686_v46 = vmax.f32 %v620_v40, 0.0 }
 0x111   : > { %v671_v47 = vmax.f32 %v559_v43, 0.0  ;;  %v687_v48 = vmax.f32 %v623_v44, 0.0  ;;  %v1169_v49 = vpop.f32.mrb[12].mxu0  ;;  %v1217_v51 = vpop.f32.mrb[12].mxu1 }
 0x112   : > { %v1170_v52 = vpop.f32.mrb[13].mxu0  ;;  %v1218_v53 = vpop.f32.mrb[13].mxu1 }
 0x113   : > { %v1053_v54 = vpack.c.bf16 %v671_v47, %v670_v45  ;;  %v1093_v55 = vpack.c.bf16 %v687_v48, %v686_v46  ;;  %v1171_v56 = vadd.f32 %v1170_v52, %v1169_v49  ;;  %v1219_v57 = vadd.f32 %v1218_v53, %v1217_v51  ;;  %v1172_v58 = vpop.f32.mrb[14].mxu0  ;;  %v1220_v59 = vpop.f32.mrb[14].mxu1 }
 0x114   : > { %v1173_v60 = vpop.f32.mrb[15].mxu0  ;;  %v1221_v61 = vpop.f32.mrb[15].mxu1 }
 0x115   : > { %1121 = vst [vmem:[%s1472_s4 + $0x10] sm:$0xff] %v1053_v54   ;;  %1129 = vst [vmem:[%s1472_s4 + $0x50] sm:$0xff] %v1093_v55   ;;  %v564_v62 = vadd.f32 %v1171_v56, %v1462_v50  ;;  %v628_v63 = vadd.f32 %v1219_v57, %v1462_v50  ;;  %v1174_v0 = vadd.f32 %v1173_v60, %v1172_v58 }
 0x116   : > { %v1222_v1 = vadd.f32 %v1221_v61, %v1220_v59 }
 0x117   : > { %v567_v2 = vadd.f32 %v1174_v0, %v1462_v50  ;;  %v672_v4 = vmax.f32 %v564_v62, 0.0  ;;  %v688_v5 = vmax.f32 %v628_v63, 0.0 }
 0x118   : > { %v631_v3 = vadd.f32 %v1222_v1, %v1462_v50 }
 0x119   : > { %v673_v6 = vmax.f32 %v567_v2, 0.0  ;;  %v1175_v8 = vpop.f32.mrb[16].mxu0  ;;  %v1223_v9 = vpop.f32.mrb[16].mxu1 }
 0x11a   : > { %v689_v7 = vmax.f32 %v631_v3, 0.0  ;;  %v1176_v10 = vpop.f32.mrb[17].mxu0  ;;  %v1224_v11 = vpop.f32.mrb[17].mxu1 }
 0x11b   : > { %v1058_v12 = vpack.c.bf16 %v673_v6, %v672_v4  ;;  %v1177_v14 = vadd.f32 %v1176_v10, %v1175_v8  ;;  %v1225_v15 = vadd.f32 %v1224_v11, %v1223_v9  ;;  %v1178_v16 = vpop.f32.mrb[18].mxu0  ;;  %v1226_v17 = vpop.f32.mrb[18].mxu1 }
 0x11c   : > { %v1098_v13 = vpack.c.bf16 %v689_v7, %v688_v5  ;;  %v1179_v18 = vpop.f32.mrb[19].mxu0  ;;  %v1227_v19 = vpop.f32.mrb[19].mxu1 }
 0x11d   : > { %1122 = vst [vmem:[%s1472_s4 + $0x18] sm:$0xff] %v1058_v12   ;;  %v572_v20 = vadd.f32 %v1177_v14, %v1462_v50  ;;  %v636_v21 = vadd.f32 %v1225_v15, %v1462_v50  ;;  %v1180_v22 = vadd.f32 %v1179_v18, %v1178_v16  ;;  %v1228_v23 = vadd.f32 %v1227_v19, %v1226_v17 }
 0x11e   : > { %1130 = vst [vmem:[%s1472_s4 + $0x58] sm:$0xff] %v1098_v13  }
 0x11f   : > { %v575_v24 = vadd.f32 %v1180_v22, %v1462_v50  ;;  %v639_v25 = vadd.f32 %v1228_v23, %v1462_v50  ;;  %v674_v26 = vmax.f32 %v572_v20, 0.0  ;;  %v690_v27 = vmax.f32 %v636_v21, 0.0 }
 0x121   : > { %v675_v28 = vmax.f32 %v575_v24, 0.0  ;;  %v691_v29 = vmax.f32 %v639_v25, 0.0  ;;  %v1181_v30 = vpop.f32.mrb[20].mxu0  ;;  %v1229_v31 = vpop.f32.mrb[20].mxu1 }
 0x122   : > { %v1182_v32 = vpop.f32.mrb[21].mxu0  ;;  %v1230_v33 = vpop.f32.mrb[21].mxu1 }
 0x123   : > { %v1063_v34 = vpack.c.bf16 %v675_v28, %v674_v26  ;;  %v1103_v35 = vpack.c.bf16 %v691_v29, %v690_v27  ;;  %v1183_v36 = vadd.f32 %v1182_v32, %v1181_v30  ;;  %v1231_v37 = vadd.f32 %v1230_v33, %v1229_v31  ;;  %v1184_v38 = vpop.f32.mrb[22].mxu0  ;;  %v1232_v39 = vpop.f32.mrb[22].mxu1 }
 0x124   : > { %v1185_v40 = vpop.f32.mrb[23].mxu0  ;;  %v1233_v41 = vpop.f32.mrb[23].mxu1 }
 0x125   : > { %1123 = vst [vmem:[%s1472_s4 + $0x20] sm:$0xff] %v1063_v34   ;;  %1131 = vst [vmem:[%s1472_s4 + $0x60] sm:$0xff] %v1103_v35   ;;  %v580_v42 = vadd.f32 %v1183_v36, %v1462_v50  ;;  %v644_v43 = vadd.f32 %v1231_v37, %v1462_v50  ;;  %v1186_v44 = vadd.f32 %v1185_v40, %v1184_v38 }
 0x126   : > { %v1234_v45 = vadd.f32 %v1233_v41, %v1232_v39 }
 0x127   : > { %v583_v46 = vadd.f32 %v1186_v44, %v1462_v50  ;;  %v676_v48 = vmax.f32 %v580_v42, 0.0  ;;  %v692_v49 = vmax.f32 %v644_v43, 0.0 }
 0x128   : > { %v647_v47 = vadd.f32 %v1234_v45, %v1462_v50 }
 0x129   : > { %v677_v51 = vmax.f32 %v583_v46, 0.0  ;;  %v1187_v53 = vpop.f32.mrb[24].mxu0  ;;  %v1235_v54 = vpop.f32.mrb[24].mxu1 }
 0x12a   : > { %v693_v52 = vmax.f32 %v647_v47, 0.0  ;;  %v1188_v55 = vpop.f32.mrb[25].mxu0  ;;  %v1236_v56 = vpop.f32.mrb[25].mxu1 }
 0x12b   : > { %v1068_v57 = vpack.c.bf16 %v677_v51, %v676_v48  ;;  %v1189_v59 = vadd.f32 %v1188_v55, %v1187_v53  ;;  %v1237_v60 = vadd.f32 %v1236_v56, %v1235_v54  ;;  %v1190_v61 = vpop.f32.mrb[26].mxu0  ;;  %v1238_v62 = vpop.f32.mrb[26].mxu1 }
 0x12c   : > { %v1108_v58 = vpack.c.bf16 %v693_v52, %v692_v49  ;;  %v1191_v63 = vpop.f32.mrb[27].mxu0  ;;  %v1239_v0 = vpop.f32.mrb[27].mxu1 }
 0x12d   : > { %1124 = vst [vmem:[%s1472_s4 + $0x28] sm:$0xff] %v1068_v57   ;;  %v588_v1 = vadd.f32 %v1189_v59, %v1462_v50  ;;  %v652_v2 = vadd.f32 %v1237_v60, %v1462_v50  ;;  %v1192_v3 = vadd.f32 %v1191_v63, %v1190_v61  ;;  %v1240_v4 = vadd.f32 %v1239_v0, %v1238_v62 }
 0x12e   : > { %1132 = vst [vmem:[%s1472_s4 + $0x68] sm:$0xff] %v1108_v58  }
 0x12f   : > { %v591_v5 = vadd.f32 %v1192_v3, %v1462_v50  ;;  %v655_v6 = vadd.f32 %v1240_v4, %v1462_v50  ;;  %v678_v7 = vmax.f32 %v588_v1, 0.0  ;;  %v694_v8 = vmax.f32 %v652_v2, 0.0 }
 0x131   : > { %v679_v9 = vmax.f32 %v591_v5, 0.0  ;;  %v695_v10 = vmax.f32 %v655_v6, 0.0  ;;  %v1193_v11 = vpop.f32.mrb[28].mxu0  ;;  %v1241_v12 = vpop.f32.mrb[28].mxu1 }
 0x132   : > { %v1194_v13 = vpop.f32.mrb[29].mxu0  ;;  %v1242_v14 = vpop.f32.mrb[29].mxu1 }
 0x133   : > { %v1073_v15 = vpack.c.bf16 %v679_v9, %v678_v7  ;;  %v1113_v16 = vpack.c.bf16 %v695_v10, %v694_v8  ;;  %v1195_v17 = vadd.f32 %v1194_v13, %v1193_v11  ;;  %v1243_v18 = vadd.f32 %v1242_v14, %v1241_v12  ;;  %v1196_v19 = vpop.f32.mrb[30].mxu0  ;;  %v1244_v20 = vpop.f32.mrb[30].mxu1 }
 0x134   : > { %v1197_v21 = vpop.f32.mrb[31].mxu0  ;;  %v1245_v22 = vpop.f32.mrb[31].mxu1 }
 0x135   : > { %1125 = vst [vmem:[%s1472_s4 + $0x30] sm:$0xff] %v1073_v15   ;;  %1133 = vst [vmem:[%s1472_s4 + $0x70] sm:$0xff] %v1113_v16   ;;  %v596_v23 = vadd.f32 %v1195_v17, %v1462_v50  ;;  %v660_v24 = vadd.f32 %v1243_v18, %v1462_v50  ;;  %v1198_v25 = vadd.f32 %v1197_v21, %v1196_v19 }
 0x136   : > { %v1246_v26 = vadd.f32 %v1245_v22, %v1244_v20 }
 0x137   : > { %v599_v27 = vadd.f32 %v1198_v25, %v1462_v50  ;;  %v680_v29 = vmax.f32 %v596_v23, 0.0  ;;  %v696_v30 = vmax.f32 %v660_v24, 0.0 }
 0x138   : > { %v663_v28 = vadd.f32 %v1246_v26, %v1462_v50 }
 0x139   : > { %v681_v31 = vmax.f32 %v599_v27, 0.0 }
 0x13a   : > { %v697_v32 = vmax.f32 %v663_v28, 0.0 }
 0x13b   : > { %v1078_v33 = vpack.c.bf16 %v681_v31, %v680_v29 }
 0x13c   : > { %v1118_v34 = vpack.c.bf16 %v697_v32, %v696_v30 }
 0x13d   : > { %1126 = vst [vmem:[%s1472_s4 + $0x38] sm:$0xff] %v1078_v33  }
 0x13e   : > { %1134 = vst [vmem:[%s1472_s4 + $0x78] sm:$0xff] %v1118_v34  }
 0x13f PF: > { %s13_s12 = sadd.s32 1, %s1341_s12  }
 0x140   : > { %p10_p4 = scmp.ge.s32.totalorder %s13_s12, 4  }
 0x142   :  { %12 = sbr.rel (!%p10_p4) target bundleno = 1 (0x1), region = 62 }

// kernel: geo_embedding_forward.3
= control target key start
LH: loop header
LB: loop body
LE: loop exit
PB: predicated region body
PF: predicated region fallthrough
CT: control target
= control target key end

     0   :  { %15 = vsyncpa [#allocation3], 0  ;;  %s5954_s0 = inlined_call_operand.vmem [shape: bf16[2,9,64,128], index: 0, kind: input, shape index: {}]   ;;  %s5955_s1 = inlined_call_operand.vmem [shape: bf16[9,64,128], index: 1, kind: input, shape index: {}]   ;;  %s5956_s2 = inlined_call_operand.vmem [shape: bf16[128,128], index: 2, kind: input, shape index: {}]   ;;  %s5957_s3 = inlined_call_operand.vmem [shape: f32[1,128], index: 3, kind: input, shape index: {}]   ;;  %s5958_s4 = inlined_call_operand.vmem [shape: bf16[128,128], index: 4, kind: input, shape index: {}]   ;;  %s5959_s5 = inlined_call_operand.vmem [shape: f32[1,128], index: 5, kind: input, shape index: {}]   ;;  %s5960_s6 = inlined_call_operand.vmem [shape: bf16[9,128,128], index: 6, kind: input, shape index: {}]   ;;  %s5961_s7 = inlined_call_operand.vmem [shape: f32[1,128], index: 7, kind: input, shape index: {}]   ;;  %s5962_s8 = inlined_call_operand.vmem [shape: bf16[128,128], index: 8, kind: input, shape index: {}]   ;;  %s5963_s9 = inlined_call_operand.vmem [shape: f32[1,128], index: 9, kind: input, shape index: {}]   ;;  %s5964_s10 = inlined_call_operand.hbm [shape: f32[2,1,128], index: 10, kind: output, shape index: {}]  }
   0x1   :  { %17 = vsyncpa [#allocation3 + $0x1], 0  ;;  %s4946_s13 = smov 0   ;;  %s4948_s14 = smov 0  }
   0x2   :  { %s4950_s15 = smov 0   ;;  %s4952_s16 = smov 0  }
   0x3 LB: > { %s4967_s17 = sadd.s32 4294967295, %s4888_s16   ;;  %s3265_s18 = sadd.s32 4294967294, %s4888_s16   ;;  %s4888_s16 = sphi %s4952_s16, %s5970_s16   ;;  %s4884_s15 = sphi %s4950_s15, %s5969_s15   ;;  %s4880_s14 = sphi %s4948_s14, %s5968_s14   ;;  %s4876_s13 = sphi %s4946_s13, %s5967_s13  }
   0x4   : > { %s4971_s19 = sadd.s32 1, %s4888_s16   ;;  %s245_s20 = sadd.s32 1, %s4884_s15 }
   0x5   : > { %s242_s21 = ssub.s32 %s4888_s16, %s4971_s19  ;;  %p255_p0 = scmp.ne.s32.totalorder %s4884_s15, %s4880_s14 }
   0x6   : > { %p243_p1 = scmp.eq.s32.totalorder %s242_s21, 0  ;;  %p256_p2 = scmp.eq.s32.totalorder %s4967_s17, 1 }
   0x7   : > { %p261_p3 = scmp.ne.s32.totalorder %s4880_s14, %s4876_s13  ;;  %p262_p4 = scmp.eq.s32.totalorder %s3265_s18, 1 }
   0x8   : > { %s4982_s22 = scalar_select %p243_p1, %s4884_s15, %s245_s20  }
   0x9   : > { %p4984_p5 = por %p256_p2, %p255_p0  ;;  %p4988_p6 = por %p262_p4, %p261_p3 }
   0xa   : > { %p3268_p7 = scmp.ge.s32.totalorder %s4888_s16, 1  ;;  %p315_p8 = scmp.lt.s32.totalorder %s4888_s16, 3 }
   0xc   : > { %p316_p9 = pnand %p3268_p7, %p315_p8 }
   0xd   : > { %v4692_v0 = vld [vmem:[%s5956_s2] sm:$0xff] (!%p316_p9)   ;;  %p352_p10 = scmp.lt.s32.totalorder (!%p316_p9), %s4967_s17, 1  ;;  %v4693_v1 = vld [vmem:[%s5956_s2 + $0x8] sm:$0xff] (!%p316_p9)   ;;  %v4694_v2 = vld [vmem:[%s5956_s2 + $0x10] sm:$0xff] (!%p316_p9)   ;;  %s3662_s27 = sshll.u32 (!%p316_p9), %s4967_s17, 4 }
   0xe   : > { %319 = sbr.rel (%p316_p9) target bundleno = 1041 (0x411), region = 60  ;;  %4084 = vmatprep.subr.bf16.mxu0 (!%p316_p9), %v4692_v0  ;;  %v4695_v3 = vld [vmem:[%s5956_s2 + $0x18] sm:$0xff] (!%p316_p9)   ;;  %v5019_v5 = vld [vmem:[%s5958_s4] sm:$0xff] (!%p316_p9)   ;;  %v5025_v6 = vld [vmem:[%s5958_s4 + $0x8] sm:$0xff] (!%p316_p9)  }
   0xf   : > { %4085 = vmatpush3.bf16.msra.mxu0 (!%p316_p9), %v4692_v0  ;;  %4108 = vmatprep.subr.bf16.mxu1 (!%p316_p9), %v5019_v5  ;;  %v4696_v7 = vld [vmem:[%s5956_s2 + $0x20] sm:$0xff] (!%p316_p9)   ;;  %v5036_v8 = vld [vmem:[%s5958_s4 + $0x10] sm:$0xff] (!%p316_p9)   ;;  %v4697_v9 = vld [vmem:[%s5956_s2 + $0x28] sm:$0xff] (!%p316_p9)  }
  0x10   : > { %4086 = vmatprep.subr.bf16.mxu0 (!%p316_p9), %v4693_v1  ;;  %4109 = vmatpush3.bf16.msra.mxu1 (!%p316_p9), %v5019_v5  ;;  %v5046_v10 = vld [vmem:[%s5958_s4 + $0x18] sm:$0xff] (!%p316_p9)   ;;  %v4698_v11 = vld [vmem:[%s5956_s2 + $0x30] sm:$0xff] (!%p316_p9)   ;;  %v5059_v13 = vld [vmem:[%s5958_s4 + $0x20] sm:$0xff] (!%p316_p9)  }
  0x11   : > { %4110 = vmatprep.subr.bf16.mxu1 (!%p316_p9), %v5025_v6  ;;  %v4699_v12 = vld [vmem:[%s5956_s2 + $0x38] sm:$0xff] (!%p316_p9)   ;;  %v5067_v15 = vld [vmem:[%s5958_s4 + $0x28] sm:$0xff] (!%p316_p9)   ;;  %v5080_v18 = vld [vmem:[%s5958_s4 + $0x30] sm:$0xff] (!%p316_p9)  }
  0x12   : > { %v5091_v19 = vld [vmem:[%s5958_s4 + $0x38] sm:$0xff] (!%p316_p9)   ;;  %v4734_v31 = vld [vmem:[%s5960_s6 + $0x40] sm:$0xff] (!%p316_p9)   ;;  %v4735_v34 = vld [vmem:[%s5960_s6 + $0x48] sm:$0xff] (!%p316_p9)  }
  0x13   : > { %4087 = vmatpush3.bf16.msra.mxu0 (!%p316_p9), %v4693_v1  ;;  %v4736_v35 = vld [vmem:[%s5960_s6 + $0x50] sm:$0xff] (!%p316_p9)   ;;  %v4737_v36 = vld [vmem:[%s5960_s6 + $0x58] sm:$0xff] (!%p316_p9)   ;;  %v4738_v37 = vld [vmem:[%s5960_s6 + $0x60] sm:$0xff] (!%p316_p9)  }
  0x14   : > { %4088 = vmatprep.subr.bf16.mxu0 (!%p316_p9), %v4694_v2  ;;  %4111 = vmatpush3.bf16.msra.mxu1 (!%p316_p9), %v5025_v6  ;;  %v4739_v41 = vld [vmem:[%s5960_s6 + $0x68] sm:$0xff] (!%p316_p9)   ;;  %v4742_v42 = vld [vmem:[%s5960_s6 + $0x70] sm:$0xff] (!%p316_p9)   ;;  %v4743_v43 = vld [vmem:[%s5960_s6 + $0x78] sm:$0xff] (!%p316_p9)  }
  0x15   : > { %s353_s29 = scalar_select %p352_p10, %s4967_s17, 1  ;;  %4112 = vmatprep.subr.bf16.mxu1 %v5036_v8  ;;  %v5205_v44 = vld [vmem:[%s5960_s6] sm:$0xff]   ;;  %v3809_v54 = vld [vmem:[%s5955_s1 + $0x8] sm:$0xff]  }
  0x16   : > { %v3666_v56 = vld [vmem:[%s5955_s1] sm:$0xff]   ;;  %v3671_v61 = vunpack.c.l.bf16 %v3809_v54  ;;  %s4890_s17 = smov [#allocation2]  }
  0x17   : > { %s4652_s12 = smul.u32 288, %s353_s29  ;;  %4089 = vmatpush3.bf16.msra.mxu0 %v4694_v2  ;;  %v5277_v57 = vld [vmem:[%s5959_s5] ss:$0 sm:$0xff]  ;;  %v3667_v0 = vunpack.c.l.bf16 %v3666_v56  ;;  %s4830_s25 = sshll.u32 %s4890_s17, 4  ;;  %s4831_s25 = int_to_ptr.vmem [resolvable:$false] %s4830_s25 }
  0x18   : > { %4090 = vmatprep.subr.bf16.mxu0 %v4695_v3  ;;  %4113 = vmatpush3.bf16.msra.mxu1 %v5036_v8  ;;  %s4832_s26 = scalar_lea.vmem %s4831_s25, 32 }
  0x19   : > { %s5008_s21 = scalar_lea.vmem %s5954_s0, %s4652_s12  ;;  %4114 = vmatprep.subr.bf16.mxu1 %v5046_v10  ;;  %s5912_s12 = scalar_lea.hbm %s5964_s10, %s3662_s27 }
  0x1a   : > { %v5014_v4 = vld [vmem:[%s5008_s21 + $0x80] sm:$0xff]   ;;  %v5071_v16 = vld [vmem:[%s5008_s21 + $0x88] sm:$0xff]   ;;  %v5075_v17 = vld [vmem:[%s5008_s21 + $0x90] sm:$0xff]  }
  0x1b   : > { %4100 = vmatprep.mubr.bf16.mxu0 %v5014_v4  ;;  %4091 = vmatpush3.bf16.msra.mxu0 %v4695_v3  ;;  %v4716_v14 = vld [vmem:[%s5008_s21] sm:$0xff]   ;;  %v5095_v20 = vld [vmem:[%s5008_s21 + $0x98] sm:$0xff]   ;;  %v4717_v22 = vld [vmem:[%s5008_s21 + $0x8] sm:$0xff]  }
  0x1c   : > { %4092 = vmatprep.subr.bf16.mxu0 %v4696_v7  ;;  %4115 = vmatpush3.bf16.msra.mxu1 %v5046_v10  ;;  %v4712_v21 = vld [vmem:[%s5008_s21 + $0x20] sm:$0xff]   ;;  %v4718_v23 = vld [vmem:[%s5008_s21 + $0x10] sm:$0xff]   ;;  %v4719_v24 = vld [vmem:[%s5008_s21 + $0x18] sm:$0xff]  }
  0x1d   : > { %4116 = vmatprep.subr.bf16.mxu1 %v5059_v13  ;;  %4124 = vmatprep.mubr.bf16.mxu1 %v4716_v14  ;;  %v4713_v25 = vld [vmem:[%s5008_s21 + $0x28] sm:$0xff]   ;;  %v4714_v26 = vld [vmem:[%s5008_s21 + $0x30] sm:$0xff]   ;;  %v4715_v27 = vld [vmem:[%s5008_s21 + $0x38] sm:$0xff]  }
  0x1e   : > { %v4720_v28 = vld [vmem:[%s5008_s21 + $0x40] sm:$0xff]   ;;  %v4721_v29 = vld [vmem:[%s5008_s21 + $0x48] sm:$0xff]   ;;  %v4722_v30 = vld [vmem:[%s5008_s21 + $0x50] sm:$0xff]  }
  0x1f   : > { %4093 = vmatpush3.bf16.msra.mxu0 %v4696_v7  ;;  %v4723_v32 = vld [vmem:[%s5008_s21 + $0x58] sm:$0xff]   ;;  %v4724_v33 = vld [vmem:[%s5008_s21 + $0x60] sm:$0xff]   ;;  %v4725_v38 = vld [vmem:[%s5008_s21 + $0x68] sm:$0xff]  }
  0x20   : > { %4094 = vmatprep.subr.bf16.mxu0 %v4697_v9  ;;  %4117 = vmatpush3.bf16.msra.mxu1 %v5059_v13  ;;  %v4726_v39 = vld [vmem:[%s5008_s21 + $0x70] sm:$0xff]   ;;  %v4727_v40 = vld [vmem:[%s5008_s21 + $0x78] sm:$0xff]   ;;  %v4728_v45 = vld [vmem:[%s5008_s21 + $0xa0] sm:$0xff]  }
  0x21   : > { %4118 = vmatprep.subr.bf16.mxu1 %v5067_v15  ;;  %v4729_v46 = vld [vmem:[%s5008_s21 + $0xa8] sm:$0xff]   ;;  %v4730_v47 = vld [vmem:[%s5008_s21 + $0xb0] sm:$0xff]   ;;  %v4731_v48 = vld [vmem:[%s5008_s21 + $0xb8] sm:$0xff]  }
  0x22   : > { %v4732_v49 = vld [vmem:[%s5008_s21 + $0xc0] sm:$0xff]   ;;  %v4733_v50 = vld [vmem:[%s5008_s21 + $0xc8] sm:$0xff]   ;;  %v4740_v51 = vld [vmem:[%s5008_s21 + $0xd0] sm:$0xff]  }
  0x23   : > { %4095 = vmatpush3.bf16.msra.mxu0 %v4697_v9  ;;  %v4741_v52 = vld [vmem:[%s5008_s21 + $0xd8] sm:$0xff]   ;;  %v4744_v53 = vld [vmem:[%s5008_s21 + $0xe0] sm:$0xff]   ;;  %v4745_v55 = vld [vmem:[%s5008_s21 + $0xe8] sm:$0xff]  }
  0x24   : > { %4096 = vmatprep.subr.bf16.mxu0 %v4698_v11  ;;  %4119 = vmatpush3.bf16.msra.mxu1 %v5067_v15  ;;  %v4751_v59 = vld [vmem:[%s5008_s21 + $0xf0] sm:$0xff]  }
  0x25   : > { %4120 = vmatprep.subr.bf16.mxu1 %v5080_v18 }
  0x27   : > { %4097 = vmatpush3.bf16.msra.mxu0 %v4698_v11 }
  0x28   : > { %4098 = vmatprep.subr.bf16.mxu0 %v4699_v12  ;;  %4121 = vmatpush3.bf16.msra.mxu1 %v5080_v18 }
  0x29   : > { %4122 = vmatprep.subr.bf16.mxu1 %v5091_v19 }
  0x2b   : > { %4099 = vmatpush3.bf16.msra.mxu0 %v4699_v12  ;;  %v3668_v12 = vunpack.c.h.bf16 %v3666_v56 }
  0x2c   : > { %4132 = vmatprep.subr.bf16.mxu0 %v5019_v5  ;;  %4123 = vmatpush3.bf16.msra.mxu1 %v5091_v19 }
  0x2d   : > { %4156 = vmatprep.subr.bf16.mxu1 %v4734_v31 }
  0x2e   : > { %4101 = vmatmul.mubr.bf16.vlgmr.msra.gmra.mrb[0].mxu0 %v5071_v16 }
  0x2f   : > { %4133 = vmatpush3.bf16.msra.mxu0 %v5019_v5  ;;  %4104 = vmatprep.mubr.bf16.mxu0 %v5075_v17 }
  0x30   : > { %4134 = vmatprep.subr.bf16.mxu0 %v5025_v6  ;;  %4125 = vmatmul.mubr.bf16.vlgmr.msra.gmra.mrb[0].mxu1 %v4717_v22 }
  0x31   : > { %4128 = vmatprep.mubr.bf16.mxu1 %v4718_v23  ;;  %4157 = vmatpush3.bf16.msra.mxu1 %v4734_v31  ;;  %v3810_v23 = vld [vmem:[%s5955_s1 + $0x10] sm:$0xff]  }
  0x32   : > { %4158 = vmatprep.subr.bf16.mxu1 %v4735_v34 }
  0x33   : > { %4135 = vmatpush3.bf16.msra.mxu0 %v5025_v6 }
  0x34   : > { %4136 = vmatprep.subr.bf16.mxu0 %v5036_v8 }
  0x35   : > { %4159 = vmatpush3.bf16.msra.mxu1 %v4735_v34 }
  0x36   : > { %4105 = vmatmul.mubr.bf16.gmra.mrb[4].mxu0 %v5095_v20  ;;  %4160 = vmatprep.subr.bf16.mxu1 %v4736_v35 }
  0x37   : > { %4137 = vmatpush3.bf16.msra.mxu0 %v5036_v8  ;;  %4148 = vmatprep.mubr.bf16.mxu0 %v4712_v21  ;;  %v3811_v21 = vld [vmem:[%s5955_s1 + $0x18] sm:$0xff]  }
  0x38   : > { %4138 = vmatprep.subr.bf16.mxu0 %v5046_v10  ;;  %4129 = vmatmul.mubr.bf16.gmra.mrb[4].mxu1 %v4719_v24 }
  0x39   : > { %4161 = vmatpush3.bf16.msra.mxu1 %v4736_v35 }
  0x3a   : > { %4162 = vmatprep.subr.bf16.mxu1 %v4737_v36 }
  0x3b   : > { %4139 = vmatpush3.bf16.msra.mxu0 %v5046_v10 }
  0x3c   : > { %4140 = vmatprep.subr.bf16.mxu0 %v5059_v13 }
  0x3d   : > { %4163 = vmatpush3.bf16.msra.mxu1 %v4737_v36  ;;  %v3680_v36 = vunpack.c.h.bf16 %v3811_v21 }
  0x3e   : > { %4164 = vmatprep.subr.bf16.mxu1 %v4738_v37 }
  0x3f   : > { %4141 = vmatpush3.bf16.msra.mxu0 %v5059_v13 }
  0x40   : > { %4142 = vmatprep.subr.bf16.mxu0 %v5067_v15 }
  0x41   : > { %4165 = vmatpush3.bf16.msra.mxu1 %v4738_v37  ;;  %v4824_v37 = vld [vmem:[%s5958_s4 + $0x10] sm:$0xff]  }
  0x42   : > { %4166 = vmatprep.subr.bf16.mxu1 %v4739_v41 }
  0x43   : > { %4143 = vmatpush3.bf16.msra.mxu0 %v5067_v15 }
  0x44   : > { %4144 = vmatprep.subr.bf16.mxu0 %v5080_v18 }
  0x45   : > { %4167 = vmatpush3.bf16.msra.mxu1 %v4739_v41 }
  0x46   : > { %4168 = vmatprep.subr.bf16.mxu1 %v4742_v42 }
  0x47   : > { %4145 = vmatpush3.bf16.msra.mxu0 %v5080_v18 }
  0x48   : > { %4146 = vmatprep.subr.bf16.mxu0 %v5091_v19 }
  0x49   : > { %4169 = vmatpush3.bf16.msra.mxu1 %v4742_v42 }
  0x4a   : > { %4170 = vmatprep.subr.bf16.mxu1 %v4743_v43 }
  0x4b   : > { %4147 = vmatpush3.bf16.msra.mxu0 %v5091_v19 }
  0x4c   : > { %4204 = vmatprep.subr.bf16.mxu0 %v5019_v5 }
  0x4d   : > { %4171 = vmatpush3.bf16.msra.mxu1 %v4743_v43 }
  0x4e   : > { %4149 = vmatmul.mubr.bf16.vlgmr.msra.gmra.mrb[8].mxu0 %v4713_v25  ;;  %4180 = vmatprep.subr.bf16.mxu1 %v5205_v44  ;;  %v4756_v25 = vld [vmem:[%s5008_s21 + $0x100] sm:$0xff]  }
  0x4f   : > { %4152 = vmatprep.mubr.bf16.mxu0 %v4714_v26  ;;  %4205 = vmatpush3.bf16.msra.mxu0 %v5019_v5 }
  0x50   : > { %4206 = vmatprep.subr.bf16.mxu0 %v5025_v6 }
  0x53   : > { %4207 = vmatpush3.bf16.msra.mxu0 %v5025_v6 }
  0x54   : > { %4208 = vmatprep.subr.bf16.mxu0 %v5036_v8 }
  0x56   : > { %4153 = vmatmul.mubr.bf16.gmra.mrb[12].mxu0 %v4715_v27 }
  0x57   : > { %4209 = vmatpush3.bf16.msra.mxu0 %v5036_v8  ;;  %4220 = vmatprep.mubr.bf16.mxu0 %v4720_v28 }
  0x58   : > { %4210 = vmatprep.subr.bf16.mxu0 %v5046_v10 }
  0x5b   : > { %4211 = vmatpush3.bf16.msra.mxu0 %v5046_v10 }
  0x5c   : > { %4212 = vmatprep.subr.bf16.mxu0 %v5059_v13 }
  0x5f   : > { %4213 = vmatpush3.bf16.msra.mxu0 %v5059_v13 }
  0x60   : > { %4214 = vmatprep.subr.bf16.mxu0 %v5067_v15 }
  0x63   : > { %4215 = vmatpush3.bf16.msra.mxu0 %v5067_v15 }
  0x64   : > { %4216 = vmatprep.subr.bf16.mxu0 %v5080_v18 }
  0x67   : > { %4217 = vmatpush3.bf16.msra.mxu0 %v5080_v18 }
  0x68   : > { %4218 = vmatprep.subr.bf16.mxu0 %v5091_v19 }
  0x6b   : > { %4219 = vmatpush3.bf16.msra.mxu0 %v5091_v19 }
  0x6c   : > { %4252 = vmatprep.subr.bf16.mxu0 %v5019_v5 }
  0x6e   : > { %4221 = vmatmul.mubr.bf16.vlgmr.msra.gmra.mrb[16].mxu0 %v4721_v29  ;;  %v3679_v29 = vunpack.c.l.bf16 %v3811_v21 }
  0x6f   : > { %4253 = vmatpush3.bf16.msra.mxu0 %v5019_v5  ;;  %4224 = vmatprep.mubr.bf16.mxu0 %v4722_v30 }
  0x70   : > { %4254 = vmatprep.subr.bf16.mxu0 %v5025_v6 }
  0x73   : > { %4255 = vmatpush3.bf16.msra.mxu0 %v5025_v6 }
  0x74   : > { %4256 = vmatprep.subr.bf16.mxu0 %v5036_v8 }
  0x76   : > { %4225 = vmatmul.mubr.bf16.gmra.mrb[20].mxu0 %v4723_v32 }
  0x77   : > { %4257 = vmatpush3.bf16.msra.mxu0 %v5036_v8  ;;  %4268 = vmatprep.mubr.bf16.mxu0 %v4724_v33  ;;  %v3675_v33 = vunpack.c.l.bf16 %v3810_v23 }
  0x78   : > { %4258 = vmatprep.subr.bf16.mxu0 %v5046_v10 }
  0x7b   : > { %4259 = vmatpush3.bf16.msra.mxu0 %v5046_v10 }
  0x7c   : > { %4260 = vmatprep.subr.bf16.mxu0 %v5059_v13 }
  0x7f   : > { %4261 = vmatpush3.bf16.msra.mxu0 %v5059_v13 }
  0x80   : > { %4262 = vmatprep.subr.bf16.mxu0 %v5067_v15 }
  0x83   : > { %4263 = vmatpush3.bf16.msra.mxu0 %v5067_v15 }
  0x84   : > { %4264 = vmatprep.subr.bf16.mxu0 %v5080_v18 }
  0x87   : > { %4265 = vmatpush3.bf16.msra.mxu0 %v5080_v18 }
  0x88   : > { %4266 = vmatprep.subr.bf16.mxu0 %v5091_v19 }
  0x8b   : > { %4267 = vmatpush3.bf16.msra.mxu0 %v5091_v19 }
  0x8c   : > { %4300 = vmatprep.subr.bf16.mxu0 %v5019_v5 }
  0x8e   : > { %4269 = vmatmul.mubr.bf16.vlgmr.msra.gmra.mrb[24].mxu0 %v4725_v38 }
  0x8f   : > { %4301 = vmatpush3.bf16.msra.mxu0 %v5019_v5  ;;  %4272 = vmatprep.mubr.bf16.mxu0 %v4726_v39 }
  0x90   : > { %4302 = vmatprep.subr.bf16.mxu0 %v5025_v6 }
  0x93   : > { %4303 = vmatpush3.bf16.msra.mxu0 %v5025_v6 }
  0x94   : > { %4304 = vmatprep.subr.bf16.mxu0 %v5036_v8 }
  0x96   : > { %4273 = vmatmul.mubr.bf16.gmra.mrb[28].mxu0 %v4727_v40  ;;  %v3676_v40 = vunpack.c.h.bf16 %v3810_v23  ;;  %v4757_v23 = vld [vmem:[%s5008_s21 + $0x108] sm:$0xff]  }
  0x97   : > { %4305 = vmatpush3.bf16.msra.mxu0 %v5036_v8  ;;  %4316 = vmatprep.mubr.bf16.mxu0 %v5014_v4  ;;  %v3672_v4 = vunpack.c.h.bf16 %v3809_v54 }
  0x98   : > { %4306 = vmatprep.subr.bf16.mxu0 %v5046_v10 }
  0x9b   : > { %4307 = vmatpush3.bf16.msra.mxu0 %v5046_v10 }
  0x9c   : > { %4308 = vmatprep.subr.bf16.mxu0 %v5059_v13 }
  0x9f   : > { %4309 = vmatpush3.bf16.msra.mxu0 %v5059_v13 }
  0xa0   : > { %4310 = vmatprep.subr.bf16.mxu0 %v5067_v15 }
  0xa3   : > { %4311 = vmatpush3.bf16.msra.mxu0 %v5067_v15 }
  0xa4   : > { %4312 = vmatprep.subr.bf16.mxu0 %v5080_v18 }
  0xa7   : > { %4313 = vmatpush3.bf16.msra.mxu0 %v5080_v18 }
  0xa8   : > { %4314 = vmatprep.subr.bf16.mxu0 %v5091_v19 }
  0xab   : > { %4315 = vmatpush3.bf16.msra.mxu0 %v5091_v19 }
  0xac   : > { %4348 = vmatprep.subr.bf16.mxu0 %v5019_v5 }
  0xae   : > { %4317 = vmatmul.mubr.bf16.vlgmr.msra.gmra.mrb[32].mxu0 %v5071_v16 }
  0xaf   : > { %4349 = vmatpush3.bf16.msra.mxu0 %v5019_v5  ;;  %4320 = vmatprep.mubr.bf16.mxu0 %v5075_v17 }
  0xb0   : > { %4350 = vmatprep.subr.bf16.mxu0 %v5025_v6 }
  0xb3   : > { %4351 = vmatpush3.bf16.msra.mxu0 %v5025_v6 }
  0xb4   : > { %4352 = vmatprep.subr.bf16.mxu0 %v5036_v8 }
  0xb6   : > { %4321 = vmatmul.mubr.bf16.gmra.mrb[36].mxu0 %v5095_v20 }
  0xb7   : > { %4353 = vmatpush3.bf16.msra.mxu0 %v5036_v8  ;;  %4364 = vmatprep.mubr.bf16.mxu0 %v4728_v45 }
  0xb8   : > { %4354 = vmatprep.subr.bf16.mxu0 %v5046_v10 }
  0xbb   : > { %4355 = vmatpush3.bf16.msra.mxu0 %v5046_v10 }
  0xbc   : > { %4356 = vmatprep.subr.bf16.mxu0 %v5059_v13 }
  0xbf   : > { %4357 = vmatpush3.bf16.msra.mxu0 %v5059_v13 }
  0xc0   : > { %4358 = vmatprep.subr.bf16.mxu0 %v5067_v15 }
  0xc3   : > { %4359 = vmatpush3.bf16.msra.mxu0 %v5067_v15 }
  0xc4   : > { %4360 = vmatprep.subr.bf16.mxu0 %v5080_v18 }
  0xc7   : > { %4361 = vmatpush3.bf16.msra.mxu0 %v5080_v18 }
  0xc8   : > { %4362 = vmatprep.subr.bf16.mxu0 %v5091_v19 }
  0xcb   : > { %4363 = vmatpush3.bf16.msra.mxu0 %v5091_v19 }
  0xcc   : > { %4396 = vmatprep.subr.bf16.mxu0 %v5019_v5 }
  0xce   : > { %4365 = vmatmul.mubr.bf16.vlgmr.msra.gmra.mrb[40].mxu0 %v4729_v46 }
  0xcf   : > { %4397 = vmatpush3.bf16.msra.mxu0 %v5019_v5  ;;  %4368 = vmatprep.mubr.bf16.mxu0 %v4730_v47 }
  0xd0   : > { %4398 = vmatprep.subr.bf16.mxu0 %v5025_v6 }
  0xd3   : > { %4399 = vmatpush3.bf16.msra.mxu0 %v5025_v6 }
  0xd4   : > { %4400 = vmatprep.subr.bf16.mxu0 %v5036_v8 }
  0xd6   : > { %4369 = vmatmul.mubr.bf16.gmra.mrb[44].mxu0 %v4731_v48 }
  0xd7   : > { %4401 = vmatpush3.bf16.msra.mxu0 %v5036_v8  ;;  %4412 = vmatprep.mubr.bf16.mxu0 %v4732_v49 }
  0xd8   : > { %4402 = vmatprep.subr.bf16.mxu0 %v5046_v10 }
  0xdb   : > { %4403 = vmatpush3.bf16.msra.mxu0 %v5046_v10 }
  0xdc   : > { %4404 = vmatprep.subr.bf16.mxu0 %v5059_v13 }
  0xdf   : > { %4405 = vmatpush3.bf16.msra.mxu0 %v5059_v13 }
  0xe0   : > { %4406 = vmatprep.subr.bf16.mxu0 %v5067_v15 }
  0xe3   : > { %4407 = vmatpush3.bf16.msra.mxu0 %v5067_v15 }
  0xe4   : > { %4408 = vmatprep.subr.bf16.mxu0 %v5080_v18 }
  0xe7   : > { %4409 = vmatpush3.bf16.msra.mxu0 %v5080_v18 }
  0xe8   : > { %4410 = vmatprep.subr.bf16.mxu0 %v5091_v19 }
  0xeb   : > { %4411 = vmatpush3.bf16.msra.mxu0 %v5091_v19 }
  0xec   : > { %4444 = vmatprep.subr.bf16.mxu0 %v5019_v5 }
  0xee   : > { %4413 = vmatmul.mubr.bf16.vlgmr.msra.gmra.mrb[48].mxu0 %v4733_v50 }
  0xef   : > { %4445 = vmatpush3.bf16.msra.mxu0 %v5019_v5  ;;  %4416 = vmatprep.mubr.bf16.mxu0 %v4740_v51  ;;  %v3813_v51 = vld [vmem:[%s5955_s1 + $0x28] sm:$0xff]  }
  0xf0   : > { %4446 = vmatprep.subr.bf16.mxu0 %v5025_v6  ;;  %v3687_v56 = vunpack.c.l.bf16 %v3813_v51 }
  0xf3   : > { %4447 = vmatpush3.bf16.msra.mxu0 %v5025_v6 }
  0xf4   : > { %4448 = vmatprep.subr.bf16.mxu0 %v5036_v8 }
  0xf6   : > { %4417 = vmatmul.mubr.bf16.gmra.mrb[52].mxu0 %v4741_v52 }
  0xf7   : > { %4449 = vmatpush3.bf16.msra.mxu0 %v5036_v8  ;;  %4460 = vmatprep.mubr.bf16.mxu0 %v4744_v53  ;;  %v3812_v53 = vld [vmem:[%s5955_s1 + $0x20] sm:$0xff]  }
  0xf8   : > { %4450 = vmatprep.subr.bf16.mxu0 %v5046_v10 }
  0xfb   : > { %4451 = vmatpush3.bf16.msra.mxu0 %v5046_v10 }
  0xfc   : > { %4452 = vmatprep.subr.bf16.mxu0 %v5059_v13 }
  0xff   : > { %4453 = vmatpush3.bf16.msra.mxu0 %v5059_v13 }
 0x100   : > { %4454 = vmatprep.subr.bf16.mxu0 %v5067_v15 }
 0x103   : > { %4455 = vmatpush3.bf16.msra.mxu0 %v5067_v15  ;;  %v4126_v58 = vpop.f32.mrb[0].mxu1 }
 0x104   : > { %4456 = vmatprep.subr.bf16.mxu0 %v5080_v18  ;;  %v673_v60 = vadd.f32 %v4126_v58, %v5277_v57  ;;  %v664_v62 = vpop.f32.mrb[1].mxu1 }
 0x105   : > { %v665_v63 = vadd.f32 %v5277_v57, %v664_v62  ;;  %v4127_v1 = vpop.f32.mrb[2].mxu1  ;;  %v3683_v62 = vunpack.c.l.bf16 %v3812_v53 }
 0x106   : > { %v697_v2 = vmax.f32 %v673_v60, 0.0  ;;  %v676_v3 = vadd.f32 %v4127_v1, %v5277_v57  ;;  %v667_v7 = vpop.f32.mrb[3].mxu1 }
 0x107   : > { %4457 = vmatpush3.bf16.msra.mxu0 %v5080_v18  ;;  %v695_v9 = vmax.f32 %v665_v63, 0.0  ;;  %v668_v11 = vadd.f32 %v5277_v57, %v667_v7  ;;  %v3814_v7 = vld [vmem:[%s5955_s1 + $0x30] sm:$0xff]  }
 0x108   : > { %4458 = vmatprep.subr.bf16.mxu0 %v5091_v19  ;;  %v5288_v14 = vmul.f32 %v3671_v61, %v697_v2  ;;  %v698_v16 = vmax.f32 %v676_v3, 0.0 }
 0x109   : > { %v5290_v17 = vmul.f32 %v3667_v0, %v695_v9  ;;  %v696_v20 = vmax.f32 %v668_v11, 0.0  ;;  %v3684_v0 = vunpack.c.h.bf16 %v3812_v53  ;;  %v4752_v53 = vld [vmem:[%s5960_s6 + $0x28] sm:$0xff]  }
 0x10a   : > { %v5295_v22 = vmul.f32 %v3672_v4, %v698_v16 }
 0x10b   : > { %4459 = vmatpush3.bf16.msra.mxu0 %v5091_v19  ;;  %v5302_v24 = vmul.f32 %v3668_v12, %v696_v20  ;;  %v4130_v26 = vpop.f32.mrb[4].mxu1 }
 0x10c   : > { %4492 = vmatprep.subr.bf16.mxu0 %v5019_v5  ;;  %v728_v27 = vpack.c.bf16 %v5295_v22, %v5288_v14  ;;  %v689_v28 = vadd.f32 %v4130_v26, %v5277_v57  ;;  %v680_v30 = vpop.f32.mrb[5].mxu1  ;;  %v3691_v26 = vunpack.c.l.bf16 %v3814_v7 }
 0x10d   : > { %v727_v31 = vpack.c.bf16 %v5302_v24, %v5290_v17  ;;  %v681_v32 = vadd.f32 %v5277_v57, %v680_v30  ;;  %v4747_v30 = vld [vmem:[%s5960_s6 + $0x8] sm:$0xff]   ;;  %v4754_v17 = vld [vmem:[%s5960_s6 + $0x30] sm:$0xff]   ;;  %v3816_v24 = vld [vmem:[%s5955_s1 + $0x40] sm:$0xff]  }
 0x10e   : > { %4461 = vmatmul.mubr.bf16.vlgmr.msra.gmra.mrb[56].mxu0 %v4745_v55  ;;  %v701_v34 = vmax.f32 %v689_v28, 0.0 }
 0x10f   : > { %4493 = vmatpush3.bf16.msra.mxu0 %v5019_v5  ;;  %4464 = vmatprep.mubr.bf16.mxu0 %v4751_v59  ;;  %v4753_v5 = vld [vmem:[%s5008_s21 + $0xf8] sm:$0xff]   ;;  %v699_v38 = vmax.f32 %v681_v32, 0.0  ;;  %v3688_v59 = vunpack.c.h.bf16 %v3813_v51 }
 0x110   : > { %4494 = vmatprep.subr.bf16.mxu0 %v5025_v6  ;;  %v5318_v41 = vmul.f32 %v3679_v29, %v701_v34  ;;  %v4760_v29 = vld [vmem:[%s5008_s21 + $0x110] sm:$0xff]   ;;  %v4761_v51 = vld [vmem:[%s5008_s21 + $0x118] sm:$0xff]   ;;  %s350_s21 = sand.u32 1, %s4880_s14  }
 0x111   : > { %v5320_v43 = vmul.f32 %v3675_v33, %v699_v38  ;;  %s351_s28 = scalar_lea.vmem [#allocation2], %s350_s21  ;;  %s3198_s18 = scalar_lea.sflag [#allocation3], %s350_s21 }
 0x112   : > { %s3210_s29 = sshll.u32 %s351_s28, 4  ;;  %s5914_s29 = int_to_ptr.vmem [resolvable:$true] %s3210_s29 }
 0x113   : > { %4495 = vmatpush3.bf16.msra.mxu0 %v5025_v6  ;;  %v4131_v6 = vpop.f32.mrb[6].mxu1  ;;  %s4826_s20 = scalar_lea.vmem %s5914_s29, 16  ;;  %p4833_p0 = scmp.lt.s32.totalorder %s5914_s29, %s4831_s25 }
 0x114   : > { %4496 = vmatprep.subr.bf16.mxu0 %v5036_v8  ;;  %v692_v35 = vadd.f32 %v4131_v6, %v5277_v57  ;;  %v683_v8 = vpop.f32.mrb[7].mxu1  ;;  %p4827_p11 = scmp.ne.s32.totalorder %s5914_s29, %s4826_s20  ;;  %p4834_p1 = scmp.lt.s32.totalorder %s4832_s26, %s4826_s20 }
 0x115   : > { %v684_v39 = vadd.f32 %v5277_v57, %v683_v8  ;;  %v3692_v8 = vunpack.c.h.bf16 %v3814_v7 }
 0x116   : > { %4465 = vmatmul.mubr.bf16.gmra.mrb[60].mxu0 %v4753_v5  ;;  %v702_v42 = vmax.f32 %v692_v35, 0.0  ;;  %p4828_p12 = pnand %p4827_p11, %p4984_p5  ;;  %p4835_p2 = por %p4834_p1, %p4833_p0 }
 0x117   : > { %4497 = vmatpush3.bf16.msra.mxu0 %v4824_v37  ;;  %4508 = vmatprep.mubr.bf16.mxu0 %v4756_v25  ;;  %v700_v45 = vmax.f32 %v684_v39, 0.0 }
 0x118   : > { %4498 = vmatprep.subr.bf16.mxu0 %v5046_v10  ;;  %v5322_v46 = vmul.f32 %v3680_v36, %v702_v42  ;;  %p4829_p13 = pneg %p4828_p12 }
 0x119   : > { %v5325_v47 = vmul.f32 %v3676_v40, %v700_v45  ;;  %v4748_v40 = vld [vmem:[%s5960_s6 + $0x10] sm:$0xff]  }
 0x11a   : > { %v730_v48 = vpack.c.bf16 %v5322_v46, %v5318_v41  ;;  %v4766_v41 = vld [vmem:[%s5960_s6 + $0xb0] sm:$0xff]   ;;  %v3820_v46 = vld [vmem:[%s5955_s1 + $0x60] sm:$0xff]   ;;  %p4836_p3 = pnand %p4835_p2, %p4829_p13 }
 0x11b   : > { %4499 = vmatpush3.bf16.msra.mxu0 %v5046_v10  ;;  %v729_v49 = vpack.c.bf16 %v5325_v47, %v5320_v43  ;;  %v4763_v43 = vld [vmem:[%s5960_s6 + $0x98] sm:$0xff]   ;;  %v4764_v47 = vld [vmem:[%s5960_s6 + $0xa0] sm:$0xff]  }
 0x11c   : > { %4500 = vmatprep.subr.bf16.mxu0 %v5059_v13 }
 0x11f   : > { %4501 = vmatpush3.bf16.msra.mxu0 %v5059_v13 }
 0x120   : > { %4502 = vmatprep.subr.bf16.mxu0 %v5067_v15 }
 0x121   : > { %v4150_v50 = vpop.f32.mrb[8].mxu0 }
 0x122   : > { %v823_v10 = vadd.f32 %v4150_v50, %v5277_v57  ;;  %v814_v52 = vpop.f32.mrb[9].mxu0 }
 0x123   : > { %v815_v54 = vadd.f32 %v5277_v57, %v814_v52  ;;  %v4151_v55 = vpop.f32.mrb[10].mxu0  ;;  %4503 = vmatpush3.bf16.msra.mxu0 %v5067_v15  ;;  %v3815_v15 = vld [vmem:[%s5955_s1 + $0x38] sm:$0xff]  }
 0x124   : > { %v847_v13 = vmax.f32 %v823_v10, 0.0  ;;  %v826_v58 = vadd.f32 %v4151_v55, %v5277_v57  ;;  %v817_v60 = vpop.f32.mrb[11].mxu0  ;;  %4504 = vmatprep.subr.bf16.mxu0 %v5080_v18  ;;  %v3695_v21 = vunpack.c.l.bf16 %v3815_v15  ;;  %v3696_v6 = vunpack.c.h.bf16 %v3815_v15  ;;  %v4749_v52 = vld [vmem:[%s5960_s6 + $0x18] sm:$0xff]  }
 0x125   : > { %v845_v61 = vmax.f32 %v815_v54, 0.0  ;;  %v818_v63 = vadd.f32 %v5277_v57, %v817_v60  ;;  %v3817_v54 = vld [vmem:[%s5955_s1 + $0x48] sm:$0xff]  }
 0x126   : > { %v848_v1 = vmax.f32 %v826_v58, 0.0  ;;  %v872_v3 = vmul.f32 %v3687_v56, %v847_v13  ;;  %v3703_v13 = vunpack.c.l.bf16 %v3817_v54 }
 0x127   : > { %v846_v2 = vmax.f32 %v818_v63, 0.0  ;;  %4505 = vmatpush3.bf16.msra.mxu0 %v5080_v18  ;;  %v870_v9 = vmul.f32 %v3683_v62, %v845_v61  ;;  %v4755_v61 = vld [vmem:[%s5960_s6 + $0x38] sm:$0xff]  }
 0x128   : > { %v873_v4 = vmul.f32 %v3688_v59, %v848_v1  ;;  %4506 = vmatprep.subr.bf16.mxu0 %v5091_v19  ;;  %v3699_v59 = vunpack.c.l.bf16 %v3816_v24 }
 0x129   : > { %v871_v11 = vmul.f32 %v3684_v0, %v846_v2  ;;  %v4154_v12 = vpop.f32.mrb[12].mxu0  ;;  %v3704_v0 = vunpack.c.h.bf16 %v3817_v54 }
 0x12a   : > { %v879_v16 = vpack.c.bf16 %v873_v4, %v872_v3  ;;  %v839_v20 = vadd.f32 %v4154_v12, %v5277_v57  ;;  %v830_v5 = vpop.f32.mrb[13].mxu0  ;;  %v3700_v3 = vunpack.c.h.bf16 %v3816_v24  ;;  %v3819_v12 = vld [vmem:[%s5955_s1 + $0x58] sm:$0xff]  }
 0x12b   : > { %v878_v25 = vpack.c.bf16 %v871_v11, %v870_v9  ;;  %v831_v18 = vadd.f32 %v5277_v57, %v830_v5  ;;  %v4155_v28 = vpop.f32.mrb[14].mxu0  ;;  %4507 = vmatpush3.bf16.msra.mxu0 %v5091_v19 }
 0x12c   : > { %v851_v32 = vmax.f32 %v839_v20, 0.0  ;;  %v842_v33 = vadd.f32 %v4155_v28, %v5277_v57  ;;  %v833_v34 = vpop.f32.mrb[15].mxu0 }
 0x12d   : > { %4172 = vmatprep.mubr.bf16.mxu1 %v878_v25  ;;  %v849_v35 = vmax.f32 %v831_v18, 0.0  ;;  %v834_v36 = vadd.f32 %v5277_v57, %v833_v34 }
 0x12e   : > { %4173 = vmatmul.mubr.bf16.vlgmr.msra.gmra.mrb[8].mxu1 %v879_v16  ;;  %v876_v37 = vmul.f32 %v3695_v21, %v851_v32  ;;  %v852_v38 = vmax.f32 %v842_v33, 0.0  ;;  %4509 = vmatmul.mubr.bf16.vlgmr.msra.gmra.mrb[64].mxu0 %v4757_v23  ;;  %v4758_v16 = vld [vmem:[%s5960_s6 + $0x80] sm:$0xff]   ;;  %v3818_v21 = vld [vmem:[%s5955_s1 + $0x50] sm:$0xff]  }
 0x12f   : > { %4181 = vmatpush3.bf16.msra.mxu1 %v5205_v44  ;;  %v874_v19 = vmul.f32 %v3691_v26, %v849_v35  ;;  %v850_v39 = vmax.f32 %v834_v36, 0.0  ;;  %4512 = vmatprep.mubr.bf16.mxu0 %v4760_v29  ;;  %v4750_v44 = vld [vmem:[%s5960_s6 + $0x20] sm:$0xff]   ;;  %v3711_v26 = vunpack.c.l.bf16 %v3819_v12  ;;  %v3707_v32 = vunpack.c.l.bf16 %v3818_v21 }
 0x130   : > { %4182 = vmatprep.subr.bf16.mxu1 %v4747_v30  ;;  %v877_v42 = vmul.f32 %v3696_v6, %v852_v38  ;;  %v4759_v6 = vld [vmem:[%s5960_s6 + $0x88] sm:$0xff]   ;;  %v3712_v36 = vunpack.c.h.bf16 %v3819_v12 }
 0x131   : > { %v875_v45 = vmul.f32 %v3692_v8, %v850_v39 }
 0x132   : > { %v881_v50 = vpack.c.bf16 %v877_v42, %v876_v37 }
 0x133   : > { %4183 = vmatpush3.bf16.msra.mxu1 %v4747_v30  ;;  %v880_v10 = vpack.c.bf16 %v875_v45, %v874_v19  ;;  %v3708_v19 = vunpack.c.h.bf16 %v3818_v21 }
 0x134   : > { %4184 = vmatprep.subr.bf16.mxu1 %v4748_v40 }
 0x135   : > { %4176 = vmatprep.mubr.bf16.mxu1 %v880_v10  ;;  %v3821_v10 = vld [vmem:[%s5955_s1 + $0x68] sm:$0xff]  }
 0x136   : > { %4177 = vmatmul.mubr.bf16.gmra.mrb[12].mxu1 %v881_v50  ;;  %4513 = vmatmul.mubr.bf16.gmra.mrb[68].mxu0 %v4761_v51  ;;  %v4762_v50 = vld [vmem:[%s5960_s6 + $0x90] sm:$0xff]  }
 0x137   : > { %4185 = vmatpush3.bf16.msra.mxu1 %v4748_v40  ;;  %4196 = vmatprep.mubr.bf16.mxu1 %v727_v31 }
 0x138   : > { %4186 = vmatprep.subr.bf16.mxu1 %v4749_v52 }
 0x13b   : > { %4187 = vmatpush3.bf16.msra.mxu1 %v4749_v52 }
 0x13c   : > { %4188 = vmatprep.subr.bf16.mxu1 %v4750_v44 }
 0x13f   : > { %4189 = vmatpush3.bf16.msra.mxu1 %v4750_v44  ;;  %v3719_v44 = vunpack.c.l.bf16 %v3821_v10 }
 0x140   : > { %4190 = vmatprep.subr.bf16.mxu1 %v4752_v53 }
 0x141   : > { %v4222_v31 = vpop.f32.mrb[16].mxu0 }
 0x142   : > { %v1201_v55 = vadd.f32 %v4222_v31, %v5277_v57  ;;  %v1192_v56 = vpop.f32.mrb[17].mxu0  ;;  %v4767_v31 = vld [vmem:[%s5960_s6 + $0xb8] sm:$0xff]  }
 0x143   : > { %4191 = vmatpush3.bf16.msra.mxu1 %v4752_v53  ;;  %v1193_v58 = vadd.f32 %v5277_v57, %v1192_v56  ;;  %v4223_v60 = vpop.f32.mrb[18].mxu0  ;;  %v3720_v56 = vunpack.c.h.bf16 %v3821_v10 }
 0x144   : > { %4192 = vmatprep.subr.bf16.mxu1 %v4754_v17  ;;  %v1225_v62 = vmax.f32 %v1201_v55, 0.0  ;;  %v1204_v63 = vadd.f32 %v4223_v60, %v5277_v57  ;;  %v1195_v1 = vpop.f32.mrb[19].mxu0 }
 0x145   : > { %v1223_v2 = vmax.f32 %v1193_v58, 0.0  ;;  %v1196_v15 = vadd.f32 %v5277_v57, %v1195_v1 }
 0x146   : > { %v5397_v4 = vmul.f32 %v3703_v13, %v1225_v62  ;;  %v1226_v7 = vmax.f32 %v1204_v63, 0.0 }
 0x147   : > { %4193 = vmatpush3.bf16.msra.mxu1 %v4754_v17  ;;  %v1248_v9 = vmul.f32 %v3699_v59, %v1223_v2  ;;  %v1224_v11 = vmax.f32 %v1196_v15, 0.0  ;;  %v3715_v17 = vunpack.c.l.bf16 %v3820_v46  ;;  %v3823_v2 = vld [vmem:[%s5955_s1 + $0x78] sm:$0xff]   ;;  %v4768_v15 = vld [vmem:[%s5960_s6 + $0xc0] sm:$0xff]  }
 0x148   : > { %4194 = vmatprep.subr.bf16.mxu1 %v4755_v61  ;;  %v5405_v20 = vmul.f32 %v3704_v0, %v1226_v7  ;;  %v3822_v7 = vld [vmem:[%s5955_s1 + $0x70] sm:$0xff]   ;;  %v3727_v21 = vunpack.c.l.bf16 %v3823_v2 }
 0x149   : > { %v1249_v5 = vmul.f32 %v3700_v3, %v1224_v11  ;;  %v4226_v23 = vpop.f32.mrb[20].mxu0 }
 0x14a   : > { %v1257_v25 = vpack.c.bf16 %v5405_v20, %v5397_v4  ;;  %v1217_v18 = vadd.f32 %v4226_v23, %v5277_v57  ;;  %v1208_v28 = vpop.f32.mrb[21].mxu0 }
 0x14b   : > { %4195 = vmatpush3.bf16.msra.mxu1 %v4755_v61  ;;  %v1256_v29 = vpack.c.bf16 %v1249_v5, %v1248_v9  ;;  %v1209_v30 = vadd.f32 %v5277_v57, %v1208_v28  ;;  %v4227_v33 = vpop.f32.mrb[22].mxu0  ;;  %v3716_v61 = vunpack.c.h.bf16 %v3820_v46 }
 0x14c   : > { %4228 = vmatprep.subr.bf16.mxu1 %v4758_v16  ;;  %v1229_v34 = vmax.f32 %v1217_v18, 0.0  ;;  %v1220_v35 = vadd.f32 %v4227_v33, %v5277_v57  ;;  %v1211_v8 = vpop.f32.mrb[23].mxu0  ;;  %v3728_v33 = vunpack.c.h.bf16 %v3823_v2 }
 0x14d   : > { %v1227_v37 = vmax.f32 %v1209_v30, 0.0  ;;  %v1212_v38 = vadd.f32 %v5277_v57, %v1211_v8 }
 0x14e   : > { %4197 = vmatmul.mubr.bf16.vlgmr.msra.gmra.mrb[8].mxu1 %v728_v27  ;;  %v5422_v39 = vmul.f32 %v3711_v26, %v1229_v34  ;;  %v1230_v40 = vmax.f32 %v1220_v35, 0.0  ;;  %v3723_v26 = vunpack.c.l.bf16 %v3822_v7 }
 0x14f   : > { %4229 = vmatpush3.bf16.msra.mxu1 %v4758_v16  ;;  %4200 = vmatprep.mubr.bf16.mxu1 %v729_v49  ;;  %v5427_v42 = vmul.f32 %v3707_v32, %v1227_v37  ;;  %v1228_v45 = vmax.f32 %v1212_v38, 0.0  ;;  %v4765_v49 = vld [vmem:[%s5960_s6 + $0xa8] sm:$0xff]  }
 0x150   : > { %4230 = vmatprep.subr.bf16.mxu1 %v4759_v6  ;;  %v5432_v51 = vmul.f32 %v3712_v36, %v1230_v40  ;;  %v3724_v36 = vunpack.c.h.bf16 %v3822_v7  ;;  %v4770_v40 = vld [vmem:[%s5960_s6 + $0xd0] sm:$0xff]  }
 0x151   : > { %v5434_v14 = vmul.f32 %v3708_v19, %v1228_v45 }
 0x152   : > { %v1259_v22 = vpack.c.bf16 %v5432_v51, %v5422_v39  ;;  %v4774_v39 = vld [vmem:[%s5960_s6 + $0xf0] sm:$0xff]   ;;  %v3824_v51 = vld [vmem:[%s5955_s1 + $0x80] sm:$0xff]  }
 0x153   : > { %4231 = vmatpush3.bf16.msra.mxu1 %v4759_v6  ;;  %v1258_v27 = vpack.c.bf16 %v5434_v14, %v5427_v42  ;;  %v4771_v42 = vld [vmem:[%s5960_s6 + $0xd8] sm:$0xff]   ;;  %v4773_v14 = vld [vmem:[%s5960_s6 + $0xe8] sm:$0xff]  }
 0x154   : > { %4232 = vmatprep.subr.bf16.mxu1 %v4762_v50 }
 0x156   : > { %4201 = vmatmul.mubr.bf16.gmra.mrb[12].mxu1 %v730_v48 }
 0x157   : > { %4233 = vmatpush3.bf16.msra.mxu1 %v4762_v50  ;;  %4244 = vmatprep.mubr.bf16.mxu1 %v1256_v29  ;;  %v4769_v29 = vld [vmem:[%s5960_s6 + $0xc8] sm:$0xff]   ;;  %v4772_v50 = vld [vmem:[%s5960_s6 + $0xe0] sm:$0xff]  }
 0x158   : > { %4234 = vmatprep.subr.bf16.mxu1 %v4763_v43 }
 0x15b   : > { %4235 = vmatpush3.bf16.msra.mxu1 %v4763_v43 }
 0x15c   : > { %4236 = vmatprep.subr.bf16.mxu1 %v4764_v47 }
 0x15f   : > { %4237 = vmatpush3.bf16.msra.mxu1 %v4764_v47 }
 0x160   : > { %4238 = vmatprep.subr.bf16.mxu1 %v4765_v49 }
 0x161   : > { %v4270_v48 = vpop.f32.mrb[24].mxu0 }
 0x162   : > { %v1474_v52 = vadd.f32 %v4270_v48, %v5277_v57  ;;  %v1465_v53 = vpop.f32.mrb[25].mxu0  ;;  %v4775_v48 = vld [vmem:[%s5960_s6 + $0xf8] sm:$0xff]  }
 0x163   : > { %4239 = vmatpush3.bf16.msra.mxu1 %v4765_v49  ;;  %v1466_v54 = vadd.f32 %v5277_v57, %v1465_v53  ;;  %v4271_v24 = vpop.f32.mrb[26].mxu0 }
 0x164   : > { %4240 = vmatprep.subr.bf16.mxu1 %v4766_v41  ;;  %v1498_v55 = vmax.f32 %v1474_v52, 0.0  ;;  %v1477_v13 = vadd.f32 %v4271_v24, %v5277_v57  ;;  %v1468_v58 = vpop.f32.mrb[27].mxu0 }
 0x165   : > { %v1496_v59 = vmax.f32 %v1466_v54, 0.0  ;;  %v1469_v60 = vadd.f32 %v5277_v57, %v1468_v58 }
 0x166   : > { %v5468_v62 = vmul.f32 %v3719_v44, %v1498_v55  ;;  %v1499_v63 = vmax.f32 %v1477_v13, 0.0 }
 0x167   : > { %4241 = vmatpush3.bf16.msra.mxu1 %v4766_v41  ;;  %v1521_v0 = vmul.f32 %v3715_v17, %v1496_v59  ;;  %v1497_v1 = vmax.f32 %v1469_v60, 0.0  ;;  %v3731_v41 = vunpack.c.l.bf16 %v3824_v51  ;;  %v3827_v59 = vld [vmem:[%s5955_s1 + $0x98] sm:$0xff]   ;;  %v4776_v60 = vld [vmem:[%s5960_s6 + $0x100] sm:$0xff]  }
 0x168   : > { %4242 = vmatprep.subr.bf16.mxu1 %v4767_v31  ;;  %v5476_v3 = vmul.f32 %v3720_v56, %v1499_v63  ;;  %v3826_v63 = vld [vmem:[%s5955_s1 + $0x90] sm:$0xff]   ;;  %v3743_v7 = vunpack.c.l.bf16 %v3827_v59 }
 0x169   : > { %v1522_v9 = vmul.f32 %v3716_v61, %v1497_v1  ;;  %v4274_v11 = vpop.f32.mrb[28].mxu0 }
 0x16a   : > { %v1530_v12 = vpack.c.bf16 %v5476_v3, %v5468_v62  ;;  %v1490_v16 = vadd.f32 %v4274_v11, %v5277_v57  ;;  %v1481_v5 = vpop.f32.mrb[29].mxu0 }
 0x16b   : > { %4243 = vmatpush3.bf16.msra.mxu1 %v4767_v31  ;;  %v1529_v23 = vpack.c.bf16 %v1522_v9, %v1521_v0  ;;  %v1482_v18 = vadd.f32 %v5277_v57, %v1481_v5  ;;  %v4275_v28 = vpop.f32.mrb[30].mxu0  ;;  %v3732_v31 = vunpack.c.h.bf16 %v3824_v51 }
 0x16c   : > { %4276 = vmatprep.subr.bf16.mxu1 %v4768_v15  ;;  %v1502_v30 = vmax.f32 %v1490_v16, 0.0  ;;  %v1493_v32 = vadd.f32 %v4275_v28, %v5277_v57  ;;  %v1484_v6 = vpop.f32.mrb[31].mxu0  ;;  %v3744_v28 = vunpack.c.h.bf16 %v3827_v59 }
 0x16d   : > { %v1500_v34 = vmax.f32 %v1482_v18, 0.0  ;;  %v1485_v35 = vadd.f32 %v5277_v57, %v1484_v6 }
 0x16e   : > { %4245 = vmatmul.mubr.bf16.vlgmr.msra.gmra.mrb[8].mxu1 %v1257_v25  ;;  %v5493_v8 = vmul.f32 %v3727_v21, %v1502_v30  ;;  %v1503_v37 = vmax.f32 %v1493_v32, 0.0  ;;  %v3739_v21 = vunpack.c.l.bf16 %v3826_v63 }
 0x16f   : > { %4277 = vmatpush3.bf16.msra.mxu1 %v4768_v15  ;;  %4248 = vmatprep.mubr.bf16.mxu1 %v1258_v27  ;;  %v5498_v38 = vmul.f32 %v3723_v26, %v1500_v34  ;;  %v1501_v19 = vmax.f32 %v1485_v35, 0.0  ;;  %v3825_v27 = vld [vmem:[%s5955_s1 + $0x88] sm:$0xff]  }
 0x170   : > { %4278 = vmatprep.subr.bf16.mxu1 %v4769_v29  ;;  %v5503_v45 = vmul.f32 %v3728_v33, %v1503_v37  ;;  %v3735_v47 = vunpack.c.l.bf16 %v3825_v27  ;;  %v3736_v53 = vunpack.c.h.bf16 %v3825_v27  ;;  %v3740_v33 = vunpack.c.h.bf16 %v3826_v63  ;;  %v4778_v37 = vld [vmem:[%s5960_s6 + $0x110] sm:$0xff]  }
 0x171   : > { %v5505_v4 = vmul.f32 %v3724_v36, %v1501_v19 }
 0x172   : > { %v1532_v20 = vpack.c.bf16 %v5503_v45, %v5493_v8  ;;  %v4782_v8 = vld [vmem:[%s5960_s6 + $0x130] sm:$0xff]   ;;  %v3828_v45 = vld [vmem:[%s5955_s1 + $0xa0] sm:$0xff]  }
 0x173   : > { %4279 = vmatpush3.bf16.msra.mxu1 %v4769_v29  ;;  %v1531_v25 = vpack.c.bf16 %v5505_v4, %v5498_v38  ;;  %v4779_v38 = vld [vmem:[%s5960_s6 + $0x118] sm:$0xff]   ;;  %v4781_v4 = vld [vmem:[%s5960_s6 + $0x128] sm:$0xff]  }
 0x174   : > { %4280 = vmatprep.subr.bf16.mxu1 %v4770_v40 }
 0x176   : > { %4249 = vmatmul.mubr.bf16.gmra.mrb[12].mxu1 %v1259_v22 }
 0x177   : > { %4281 = vmatpush3.bf16.msra.mxu1 %v4770_v40  ;;  %4292 = vmatprep.mubr.bf16.mxu1 %v1529_v23  ;;  %v4777_v23 = vld [vmem:[%s5960_s6 + $0x108] sm:$0xff]   ;;  %v4780_v40 = vld [vmem:[%s5960_s6 + $0x120] sm:$0xff]  }
 0x178   : > { %4282 = vmatprep.subr.bf16.mxu1 %v4771_v42 }
 0x17b   : > { %4283 = vmatpush3.bf16.msra.mxu1 %v4771_v42 }
 0x17c   : > { %4284 = vmatprep.subr.bf16.mxu1 %v4772_v50 }
 0x17f   : > { %4285 = vmatpush3.bf16.msra.mxu1 %v4772_v50 }
 0x180   : > { %4286 = vmatprep.subr.bf16.mxu1 %v4773_v14 }
 0x181   : > { %v4318_v22 = vpop.f32.mrb[32].mxu0 }
 0x182   : > { %v1714_v43 = vadd.f32 %v4318_v22, %v5277_v57  ;;  %v1705_v49 = vpop.f32.mrb[33].mxu0  ;;  %v4783_v22 = vld [vmem:[%s5960_s6 + $0x138] sm:$0xff]  }
 0x183   : > { %4287 = vmatpush3.bf16.msra.mxu1 %v4773_v14  ;;  %v1706_v10 = vadd.f32 %v5277_v57, %v1705_v49  ;;  %v4319_v46 = vpop.f32.mrb[34].mxu0 }
 0x184   : > { %4288 = vmatprep.subr.bf16.mxu1 %v4774_v39  ;;  %v1738_v52 = vmax.f32 %v1714_v43, 0.0  ;;  %v1717_v44 = vadd.f32 %v4319_v46, %v5277_v57  ;;  %v1708_v54 = vpop.f32.mrb[35].mxu0 }
 0x185   : > { %v1736_v17 = vmax.f32 %v1706_v10, 0.0  ;;  %v1709_v24 = vadd.f32 %v5277_v57, %v1708_v54 }
 0x186   : > { %v5539_v55 = vmul.f32 %v3735_v47, %v1738_v52  ;;  %v1739_v13 = vmax.f32 %v1717_v44, 0.0 }
 0x187   : > { %4289 = vmatpush3.bf16.msra.mxu1 %v4774_v39  ;;  %v1761_v56 = vmul.f32 %v3731_v41, %v1736_v17  ;;  %v1737_v58 = vmax.f32 %v1709_v24, 0.0  ;;  %v3747_v39 = vunpack.c.l.bf16 %v3828_v45  ;;  %v3831_v17 = vld [vmem:[%s5955_s1 + $0xb8] sm:$0xff]   ;;  %v4784_v24 = vld [vmem:[%s5960_s6 + $0x140] sm:$0xff]  }
 0x188   : > { %4290 = vmatprep.subr.bf16.mxu1 %v4775_v48  ;;  %v5547_v61 = vmul.f32 %v3736_v53, %v1739_v13  ;;  %v3830_v13 = vld [vmem:[%s5955_s1 + $0xb0] sm:$0xff]   ;;  %v3759_v63 = vunpack.c.l.bf16 %v3831_v17 }
 0x189   : > { %v1762_v0 = vmul.f32 %v3732_v31, %v1737_v58  ;;  %v4322_v1 = vpop.f32.mrb[36].mxu0 }
 0x18a   : > { %v1770_v2 = vpack.c.bf16 %v5547_v61, %v5539_v55  ;;  %v1730_v15 = vadd.f32 %v4322_v1, %v5277_v57  ;;  %v1721_v9 = vpop.f32.mrb[37].mxu0 }
 0x18b   : > { %4291 = vmatpush3.bf16.msra.mxu1 %v4775_v48  ;;  %v1769_v11 = vpack.c.bf16 %v1762_v0, %v1761_v56  ;;  %v1722_v16 = vadd.f32 %v5277_v57, %v1721_v9  ;;  %v4323_v5 = vpop.f32.mrb[38].mxu0  ;;  %v3748_v48 = vunpack.c.h.bf16 %v3828_v45 }
 0x18c   : > { %4324 = vmatprep.subr.bf16.mxu1 %v4776_v60  ;;  %v1742_v18 = vmax.f32 %v1730_v15, 0.0  ;;  %v1733_v26 = vadd.f32 %v4323_v5, %v5277_v57  ;;  %v1724_v29 = vpop.f32.mrb[39].mxu0  ;;  %v3760_v5 = vunpack.c.h.bf16 %v3831_v17  ;;  %v3835_v17 = vld [vmem:[%s5955_s1 + $0xd8] sm:$0xff]  }
 0x18d   : > { %v1740_v30 = vmax.f32 %v1722_v16, 0.0  ;;  %v1725_v32 = vadd.f32 %v5277_v57, %v1724_v29 }
 0x18e   : > { %4293 = vmatmul.mubr.bf16.vlgmr.msra.gmra.mrb[8].mxu1 %v1530_v12  ;;  %v5564_v6 = vmul.f32 %v3743_v7, %v1742_v18  ;;  %v1743_v34 = vmax.f32 %v1733_v26, 0.0  ;;  %v3755_v7 = vunpack.c.l.bf16 %v3830_v13 }
 0x18f   : > { %4325 = vmatpush3.bf16.msra.mxu1 %v4776_v60  ;;  %4296 = vmatprep.mubr.bf16.mxu1 %v1531_v25  ;;  %v5569_v35 = vmul.f32 %v3739_v21, %v1740_v30  ;;  %v1741_v36 = vmax.f32 %v1725_v32, 0.0  ;;  %v3829_v25 = vld [vmem:[%s5955_s1 + $0xa8] sm:$0xff]  }
 0x190   : > { %4326 = vmatprep.subr.bf16.mxu1 %v4777_v23  ;;  %v5574_v19 = vmul.f32 %v3744_v28, %v1743_v34  ;;  %v3751_v50 = vunpack.c.l.bf16 %v3829_v25  ;;  %v3752_v49 = vunpack.c.h.bf16 %v3829_v25  ;;  %v3756_v28 = vunpack.c.h.bf16 %v3830_v13  ;;  %v4786_v34 = vld [vmem:[%s5960_s6 + $0x150] sm:$0xff]  }
 0x191   : > { %v5576_v62 = vmul.f32 %v3740_v33, %v1741_v36 }
 0x192   : > { %v1772_v3 = vpack.c.bf16 %v5574_v19, %v5564_v6  ;;  %v4818_v6 = vld [vmem:[%s5962_s8 + $0x10] sm:$0xff]   ;;  %v4789_v19 = vld [vmem:[%s5960_s6 + $0x168] sm:$0xff]  }
 0x193   : > { %4327 = vmatpush3.bf16.msra.mxu1 %v4777_v23  ;;  %v1771_v12 = vpack.c.bf16 %v5576_v62, %v5569_v35  ;;  %v4787_v35 = vld [vmem:[%s5960_s6 + $0x158] sm:$0xff]   ;;  %v4817_v62 = vld [vmem:[%s5962_s8 + $0x8] sm:$0xff]  }
 0x194   : > { %4328 = vmatprep.subr.bf16.mxu1 %v4778_v37 }
 0x196   : > { %4297 = vmatmul.mubr.bf16.gmra.mrb[12].mxu1 %v1532_v20 }
 0x197   : > { %4329 = vmatpush3.bf16.msra.mxu1 %v4778_v37  ;;  %4340 = vmatprep.mubr.bf16.mxu1 %v1769_v11  ;;  %v4785_v11 = vld [vmem:[%s5960_s6 + $0x148] sm:$0xff]   ;;  %v4816_v37 = vld [vmem:[%s5962_s8] sm:$0xff]  }
 0x198   : > { %4330 = vmatprep.subr.bf16.mxu1 %v4779_v38  ;;  %4540 = vmatprep.subr.bf16.mxu0 %v4816_v37 }
 0x199   : > { %4541 = vmatpush3.bf16.msra.mxu0 %v4816_v37 }
 0x19a   : > { %4542 = vmatprep.subr.bf16.mxu0 %v4817_v62 }
 0x19b   : > { %4331 = vmatpush3.bf16.msra.mxu1 %v4779_v38  ;;  %v3833_v38 = vld [vmem:[%s5955_s1 + $0xc8] sm:$0xff]  }
 0x19c   : > { %4332 = vmatprep.subr.bf16.mxu1 %v4780_v40  ;;  %v3767_v45 = vunpack.c.l.bf16 %v3833_v38 }
 0x19d   : > { %4543 = vmatpush3.bf16.msra.mxu0 %v4817_v62 }
 0x19e   : > { %4544 = vmatprep.subr.bf16.mxu0 %v4818_v6 }
 0x19f   : > { %4333 = vmatpush3.bf16.msra.mxu1 %v4780_v40  ;;  %v4790_v40 = vld [vmem:[%s5960_s6 + $0x170] sm:$0xff]  }
 0x1a0   : > { %4334 = vmatprep.subr.bf16.mxu1 %v4781_v4 }
 0x1a1   : > { %v4366_v20 = vpop.f32.mrb[40].mxu0  ;;  %4545 = vmatpush3.bf16.msra.mxu0 %v4818_v6 }
 0x1a2   : > { %v1987_v42 = vadd.f32 %v4366_v20, %v5277_v57  ;;  %v1978_v14 = vpop.f32.mrb[41].mxu0 }
 0x1a3   : > { %4335 = vmatpush3.bf16.msra.mxu1 %v4781_v4  ;;  %v1979_v27 = vadd.f32 %v5277_v57, %v1978_v14  ;;  %v4367_v51 = vpop.f32.mrb[42].mxu0  ;;  %v3832_v4 = vld [vmem:[%s5955_s1 + $0xc0] sm:$0xff]  }
 0x1a4   : > { %4336 = vmatprep.subr.bf16.mxu1 %v4782_v8  ;;  %v2011_v43 = vmax.f32 %v1987_v42, 0.0  ;;  %v1990_v47 = vadd.f32 %v4367_v51, %v5277_v57  ;;  %v1981_v10 = vpop.f32.mrb[43].mxu0  ;;  %v4820_v42 = vld [vmem:[%s5962_s8 + $0x20] sm:$0xff]   ;;  %v3763_v14 = vunpack.c.l.bf16 %v3832_v4 }
 0x1a5   : > { %v2009_v41 = vmax.f32 %v1979_v27, 0.0  ;;  %v1982_v46 = vadd.f32 %v5277_v57, %v1981_v10 }
 0x1a6   : > { %v5610_v52 = vmul.f32 %v3751_v50, %v2011_v43  ;;  %v2012_v44 = vmax.f32 %v1990_v47, 0.0  ;;  %v3768_v43 = vunpack.c.h.bf16 %v3833_v38 }
 0x1a7   : > { %4337 = vmatpush3.bf16.msra.mxu1 %v4782_v8  ;;  %v2034_v53 = vmul.f32 %v3747_v39, %v2009_v41  ;;  %v2010_v54 = vmax.f32 %v1982_v46, 0.0  ;;  %v4791_v39 = vld [vmem:[%s5960_s6 + $0x178] sm:$0xff]   ;;  %v3764_v41 = vunpack.c.h.bf16 %v3832_v4 }
 0x1a8   : > { %4338 = vmatprep.subr.bf16.mxu1 %v4783_v22  ;;  %v5618_v31 = vmul.f32 %v3752_v49, %v2012_v44  ;;  %v4821_v44 = vld [vmem:[%s5962_s8 + $0x28] sm:$0xff]  }
 0x1a9   : > { %v2035_v56 = vmul.f32 %v3748_v48, %v2010_v54  ;;  %v4370_v58 = vpop.f32.mrb[44].mxu0 }
 0x1aa   : > { %v2043_v59 = vpack.c.bf16 %v5618_v31, %v5610_v52  ;;  %v2003_v60 = vadd.f32 %v4370_v58, %v5277_v57  ;;  %v1994_v0 = vpop.f32.mrb[45].mxu0 }
 0x1ab   : > { %4339 = vmatpush3.bf16.msra.mxu1 %v4783_v22  ;;  %v2042_v1 = vpack.c.bf16 %v2035_v56, %v2034_v53  ;;  %v1995_v15 = vadd.f32 %v5277_v57, %v1994_v0  ;;  %v4371_v9 = vpop.f32.mrb[46].mxu0  ;;  %v3834_v56 = vld [vmem:[%s5955_s1 + $0xd0] sm:$0xff]  }
 0x1ac   : > { %4372 = vmatprep.subr.bf16.mxu1 %v4784_v24  ;;  %v2015_v16 = vmax.f32 %v2003_v60, 0.0  ;;  %v2006_v21 = vadd.f32 %v4371_v9, %v5277_v57  ;;  %v1997_v23 = vpop.f32.mrb[47].mxu0 }
 0x1ad   : > { %v2013_v18 = vmax.f32 %v1995_v15, 0.0  ;;  %v1998_v26 = vadd.f32 %v5277_v57, %v1997_v23 }
 0x1ae   : > { %4341 = vmatmul.mubr.bf16.vlgmr.msra.gmra.mrb[8].mxu1 %v1770_v2  ;;  %v5635_v29 = vmul.f32 %v3759_v63, %v2015_v16  ;;  %v2016_v30 = vmax.f32 %v2006_v21, 0.0  ;;  %v4793_v21 = vld [vmem:[%s5960_s6 + $0x188] sm:$0xff]  }
 0x1af   : > { %4373 = vmatpush3.bf16.msra.mxu1 %v4784_v24  ;;  %4344 = vmatprep.mubr.bf16.mxu1 %v1771_v12  ;;  %v5640_v32 = vmul.f32 %v3755_v7, %v2013_v18  ;;  %v2014_v33 = vmax.f32 %v1998_v26, 0.0  ;;  %v4788_v12 = vld [vmem:[%s5960_s6 + $0x160] sm:$0xff]   ;;  %v3776_v18 = vunpack.c.h.bf16 %v3835_v17 }
 0x1b0   : > { %4374 = vmatprep.subr.bf16.mxu1 %v4785_v11  ;;  %v5645_v36 = vmul.f32 %v3760_v5, %v2016_v30  ;;  %v4792_v24 = vld [vmem:[%s5960_s6 + $0x180] sm:$0xff]  }
 0x1b1   : > { %v5647_v55 = vmul.f32 %v3756_v28, %v2014_v33  ;;  %v5723_v30 = vld [vmem:[%s5959_s5] ss:$0 sm:$0xff] }
 0x1b2   : > { %v2045_v61 = vpack.c.bf16 %v5645_v36, %v5635_v29  ;;  %v4798_v29 = vld [vmem:[%s5960_s6 + $0x1b0] sm:$0xff]   ;;  %v3836_v36 = vld [vmem:[%s5955_s1 + $0xe0] sm:$0xff]  }
 0x1b3   : > { %4375 = vmatpush3.bf16.msra.mxu1 %v4785_v11  ;;  %v2044_v2 = vpack.c.bf16 %v5647_v55, %v5640_v32  ;;  %v3771_v11 = vunpack.c.l.bf16 %v3834_v56  ;;  %v4795_v32 = vld [vmem:[%s5960_s6 + $0x198] sm:$0xff]   ;;  %v4796_v55 = vld [vmem:[%s5960_s6 + $0x1a0] sm:$0xff]  }
 0x1b4   : > { %4376 = vmatprep.subr.bf16.mxu1 %v4786_v34 }
 0x1b6   : > { %4345 = vmatmul.mubr.bf16.gmra.mrb[12].mxu1 %v1772_v3  ;;  %v4819_v3 = vld [vmem:[%s5962_s8 + $0x18] sm:$0xff]  }
 0x1b7   : > { %4377 = vmatpush3.bf16.msra.mxu1 %v4786_v34  ;;  %4388 = vmatprep.mubr.bf16.mxu1 %v2042_v1  ;;  %v3775_v1 = vunpack.c.l.bf16 %v3835_v17  ;;  %v3772_v34 = vunpack.c.h.bf16 %v3834_v56 }
 0x1b8   : > { %4378 = vmatprep.subr.bf16.mxu1 %v4787_v35  ;;  %4546 = vmatprep.subr.bf16.mxu0 %v4819_v3 }
 0x1b9   : > { %4547 = vmatpush3.bf16.msra.mxu0 %v4819_v3 }
 0x1ba   : > { %4548 = vmatprep.subr.bf16.mxu0 %v4820_v42 }
 0x1bb   : > { %4379 = vmatpush3.bf16.msra.mxu1 %v4787_v35 }
 0x1bc   : > { %4380 = vmatprep.subr.bf16.mxu1 %v4788_v12 }
 0x1bd   : > { %4549 = vmatpush3.bf16.msra.mxu0 %v4820_v42 }
 0x1be   : > { %4550 = vmatprep.subr.bf16.mxu0 %v4821_v44 }
 0x1bf   : > { %4381 = vmatpush3.bf16.msra.mxu1 %v4788_v12  ;;  %v4794_v12 = vld [vmem:[%s5960_s6 + $0x190] sm:$0xff]  }
 0x1c0   : > { %4382 = vmatprep.subr.bf16.mxu1 %v4789_v19 }
 0x1c1   : > { %v4414_v25 = vpop.f32.mrb[48].mxu0  ;;  %4551 = vmatpush3.bf16.msra.mxu0 %v4821_v44  ;;  %v3838_v44 = vld [vmem:[%s5955_s1 + $0xf0] sm:$0xff]  }
 0x1c2   : > { %v2260_v8 = vadd.f32 %v4414_v25, %v5277_v57  ;;  %v2251_v20 = vpop.f32.mrb[49].mxu0  ;;  %v3779_v25 = vunpack.c.l.bf16 %v3836_v36 }
 0x1c3   : > { %4383 = vmatpush3.bf16.msra.mxu1 %v4789_v19  ;;  %v2252_v50 = vadd.f32 %v5277_v57, %v2251_v20  ;;  %v4415_v27 = vpop.f32.mrb[50].mxu0  ;;  %v3837_v19 = vld [vmem:[%s5955_s1 + $0xe8] sm:$0xff]  }
 0x1c4   : > { %4384 = vmatprep.subr.bf16.mxu1 %v4790_v40  ;;  %v2284_v51 = vmax.f32 %v2260_v8, 0.0  ;;  %v2263_v22 = vadd.f32 %v4415_v27, %v5277_v57  ;;  %v2254_v47 = vpop.f32.mrb[51].mxu0  ;;  %v3783_v38 = vunpack.c.l.bf16 %v3837_v19 }
 0x1c5   : > { %v2282_v49 = vmax.f32 %v2252_v50, 0.0  ;;  %v2255_v10 = vadd.f32 %v5277_v57, %v2254_v47  ;;  %v3784_v50 = vunpack.c.h.bf16 %v3837_v19 }
 0x1c6   : > { %v5696_v46 = vmul.f32 %v3767_v45, %v2284_v51  ;;  %v2285_v48 = vmax.f32 %v2263_v22, 0.0  ;;  %v4799_v45 = vld [vmem:[%s5960_s6 + $0x1b8] sm:$0xff]   ;;  %v3780_v51 = vunpack.c.h.bf16 %v3836_v36 }
 0x1c7   : > { %4385 = vmatpush3.bf16.msra.mxu1 %v4790_v40  ;;  %v2307_v53 = vmul.f32 %v3763_v14, %v2282_v49  ;;  %v2283_v54 = vmax.f32 %v2255_v10, 0.0  ;;  %v3839_v10 = vld [vmem:[%s5955_s1 + $0xf8] sm:$0xff]  }
 0x1c8   : > { %4386 = vmatprep.subr.bf16.mxu1 %v4791_v39  ;;  %v5707_v13 = vmul.f32 %v3768_v43, %v2285_v48  ;;  %v3791_v56 = vunpack.c.l.bf16 %v3839_v10 }
 0x1c9   : > { %v2308_v58 = vmul.f32 %v3764_v41, %v2283_v54  ;;  %v4418_v60 = vpop.f32.mrb[52].mxu0  ;;  %v4800_v41 = vld [vmem:[%s5960_s6 + $0x1c0] sm:$0xff]  }
 0x1ca   : > { %v2316_v63 = vpack.c.bf16 %v5707_v13, %v5696_v46  ;;  %v2276_v0 = vadd.f32 %v4418_v60, %v5277_v57  ;;  %v2267_v15 = vpop.f32.mrb[53].mxu0 }
 0x1cb   : > { %4387 = vmatpush3.bf16.msra.mxu1 %v4791_v39  ;;  %v2315_v7 = vpack.c.bf16 %v2308_v58, %v2307_v53  ;;  %v2268_v9 = vadd.f32 %v5277_v57, %v2267_v15  ;;  %v4419_v16 = vpop.f32.mrb[54].mxu0 }
 0x1cc   : > { %4420 = vmatprep.subr.bf16.mxu1 %v4792_v24  ;;  %v2288_v5 = vmax.f32 %v2276_v0, 0.0  ;;  %v2279_v23 = vadd.f32 %v4419_v16, %v5277_v57  ;;  %v2270_v26 = vpop.f32.mrb[55].mxu0  ;;  %v3792_v16 = vunpack.c.h.bf16 %v3839_v10 }
 0x1cd   : > { %v2286_v28 = vmax.f32 %v2268_v9, 0.0  ;;  %v2271_v33 = vadd.f32 %v5723_v30, %v2270_v26 }
 0x1ce   : > { %4389 = vmatmul.mubr.bf16.vlgmr.msra.gmra.mrb[8].mxu1 %v2043_v59  ;;  %v5729_v35 = vmul.f32 %v3775_v1, %v2288_v5  ;;  %v2289_v37 = vmax.f32 %v2279_v23, 0.0  ;;  %v3787_v1 = vunpack.c.l.bf16 %v3838_v44 }
 0x1cf   : > { %4421 = vmatpush3.bf16.msra.mxu1 %v4792_v24  ;;  %4392 = vmatprep.mubr.bf16.mxu1 %v2044_v2  ;;  %v5734_v57 = vmul.f32 %v3771_v11, %v2286_v28  ;;  %v2287_v62 = vmax.f32 %v2271_v33, 0.0  ;;  %v4797_v2 = vld [vmem:[%s5960_s6 + $0x1a8] sm:$0xff]  }
 0x1d0   : > { %4422 = vmatprep.subr.bf16.mxu1 %v4793_v21  ;;  %v5739_v6 = vmul.f32 %v3776_v18, %v2289_v37  ;;  %v3788_v18 = vunpack.c.h.bf16 %v3838_v44  ;;  %v4802_v37 = vld [vmem:[%s5960_s6 + $0x1d0] sm:$0xff]  }
 0x1d1   : > { %v5741_v52 = vmul.f32 %v3772_v34, %v2287_v62 }
 0x1d2   : > { %v2318_v31 = vpack.c.bf16 %v5739_v6, %v5729_v35  ;;  %v4806_v35 = vld [vmem:[%s5960_s6 + $0x1f0] sm:$0xff]   ;;  %v3840_v6 = vld [vmem:[%s5955_s1 + $0x100] sm:$0xff]  }
 0x1d3   : > { %4423 = vmatpush3.bf16.msra.mxu1 %v4793_v21  ;;  %v2317_v59 = vpack.c.bf16 %v5741_v52, %v5734_v57  ;;  %v4803_v57 = vld [vmem:[%s5960_s6 + $0x1d8] sm:$0xff]   ;;  %v4805_v52 = vld [vmem:[%s5960_s6 + $0x1e8] sm:$0xff]  }
 0x1d4   : > { %4424 = vmatprep.subr.bf16.mxu1 %v4794_v12 }
 0x1d6   : > { %4393 = vmatmul.mubr.bf16.gmra.mrb[12].mxu1 %v2045_v61 }
 0x1d7   : > { %4425 = vmatpush3.bf16.msra.mxu1 %v4794_v12  ;;  %4436 = vmatprep.mubr.bf16.mxu1 %v2315_v7  ;;  %v4801_v7 = vld [vmem:[%s5960_s6 + $0x1c8] sm:$0xff]   ;;  %v4804_v12 = vld [vmem:[%s5960_s6 + $0x1e0] sm:$0xff]  }
 0x1d8   : > { %4426 = vmatprep.subr.bf16.mxu1 %v4795_v32 }
 0x1db   : > { %4427 = vmatpush3.bf16.msra.mxu1 %v4795_v32 }
 0x1dc   : > { %4428 = vmatprep.subr.bf16.mxu1 %v4796_v55 }
 0x1df   : > { %4429 = vmatpush3.bf16.msra.mxu1 %v4796_v55 }
 0x1e0   : > { %4430 = vmatprep.subr.bf16.mxu1 %v4797_v2 }
 0x1e1   : > { %v4462_v61 = vpop.f32.mrb[56].mxu0 }
 0x1e2   : > { %v2533_v3 = vadd.f32 %v5723_v30, %v4462_v61  ;;  %v2524_v40 = vpop.f32.mrb[57].mxu0  ;;  %v4807_v61 = vld [vmem:[%s5960_s6 + $0x1f8] sm:$0xff]  }
 0x1e3   : > { %4431 = vmatpush3.bf16.msra.mxu1 %v4797_v2  ;;  %v2525_v4 = vadd.f32 %v5723_v30, %v2524_v40  ;;  %v4463_v8 = vpop.f32.mrb[58].mxu0 }
 0x1e4   : > { %4432 = vmatprep.subr.bf16.mxu1 %v4798_v29  ;;  %v2557_v20 = vmax.f32 %v2533_v3, 0.0  ;;  %v2536_v42 = vadd.f32 %v5723_v30, %v4463_v8  ;;  %v2527_v14 = vpop.f32.mrb[59].mxu0 }
 0x1e5   : > { %v2555_v27 = vmax.f32 %v2525_v4, 0.0  ;;  %v2528_v39 = vadd.f32 %v5723_v30, %v2527_v14 }
 0x1e6   : > { %v5775_v22 = vmul.f32 %v3783_v38, %v2557_v20  ;;  %v2558_v43 = vmax.f32 %v2536_v42, 0.0 }
 0x1e7   : > { %4433 = vmatpush3.bf16.msra.mxu1 %v4798_v29  ;;  %v2580_v47 = vmul.f32 %v3779_v25, %v2555_v27  ;;  %v2556_v49 = vmax.f32 %v2528_v39, 0.0  ;;  %v3795_v29 = vunpack.c.l.bf16 %v3840_v6  ;;  %v3843_v27 = vld [vmem:[%s5955_s1 + $0x118] sm:$0xff]   ;;  %v4808_v39 = vld [vmem:[%s5960_s6 + $0x200] sm:$0xff]  }
 0x1e8   : > { %4434 = vmatprep.subr.bf16.mxu1 %v4799_v45  ;;  %v5783_v48 = vmul.f32 %v3784_v50, %v2558_v43  ;;  %v3842_v43 = vld [vmem:[%s5955_s1 + $0x110] sm:$0xff]   ;;  %v3807_v44 = vunpack.c.l.bf16 %v3843_v27 }
 0x1e9   : > { %v2581_v53 = vmul.f32 %v3780_v51, %v2556_v49  ;;  %v4466_v54 = vpop.f32.mrb[60].mxu0 }
 0x1ea   : > { %v2589_v17 = vpack.c.bf16 %v5783_v48, %v5775_v22  ;;  %v2549_v24 = vadd.f32 %v5723_v30, %v4466_v54  ;;  %v2540_v58 = vpop.f32.mrb[61].mxu0  ;;  %v4811_v48 = vld [vmem:[%s5960_s6 + $0x218] sm:$0xff]  }
 0x1eb   : > { %4435 = vmatpush3.bf16.msra.mxu1 %v4799_v45  ;;  %v2588_v60 = vpack.c.bf16 %v2581_v53, %v2580_v47  ;;  %v2541_v0 = vadd.f32 %v5723_v30, %v2540_v58  ;;  %v4467_v15 = vpop.f32.mrb[62].mxu0  ;;  %v3796_v45 = vunpack.c.h.bf16 %v3840_v6 }
 0x1ec   : > { %4468 = vmatprep.subr.bf16.mxu1 %v4800_v41  ;;  %v2561_v9 = vmax.f32 %v2549_v24, 0.0  ;;  %v2552_v11 = vadd.f32 %v5723_v30, %v4467_v15  ;;  %v2543_v21 = vpop.f32.mrb[63].mxu0  ;;  %v3803_v24 = vunpack.c.l.bf16 %v3842_v43  ;;  %v3808_v15 = vunpack.c.h.bf16 %v3843_v27 }
 0x1ed   : > { %v2559_v5 = vmax.f32 %v2541_v0, 0.0  ;;  %v2544_v23 = vadd.f32 %v5723_v30, %v2543_v21 }
 0x1ee   : > { %4437 = vmatmul.mubr.bf16.vlgmr.msra.gmra.mrb[8].mxu1 %v2316_v63  ;;  %v5800_v26 = vmul.f32 %v3791_v56, %v2561_v9  ;;  %v2562_v28 = vmax.f32 %v2552_v11, 0.0 }
 0x1ef   : > { %4469 = vmatpush3.bf16.msra.mxu1 %v4800_v41  ;;  %4440 = vmatprep.mubr.bf16.mxu1 %v2317_v59  ;;  %v5805_v33 = vmul.f32 %v3787_v1, %v2559_v5  ;;  %v2560_v34 = vmax.f32 %v2544_v23, 0.0  ;;  %v3841_v59 = vld [vmem:[%s5955_s1 + $0x108] sm:$0xff]  }
 0x1f0   : > { %4470 = vmatprep.subr.bf16.mxu1 %v4801_v7  ;;  %v5810_v62 = vmul.f32 %v3792_v16, %v2562_v28  ;;  %v3799_v55 = vunpack.c.l.bf16 %v3841_v59  ;;  %v3800_v40 = vunpack.c.h.bf16 %v3841_v59  ;;  %v3804_v16 = vunpack.c.h.bf16 %v3842_v43  ;;  %v4810_v28 = vld [vmem:[%s5960_s6 + $0x210] sm:$0xff]   ;;  %v3278_v43 = vld [vmem:[%s5957_s3] ss:$0 sm:$0xff] }
 0x1f1   : > { %v5812_v46 = vmul.f32 %v3788_v18, %v2560_v34 }
 0x1f2   : > { %v2591_v13 = vpack.c.bf16 %v5810_v62, %v5800_v26  ;;  %v4814_v26 = vld [vmem:[%s5960_s6 + $0x230] sm:$0xff]   ;;  %v4815_v62 = vld [vmem:[%s5960_s6 + $0x238] sm:$0xff]  }
 0x1f3   : > { %4471 = vmatpush3.bf16.msra.mxu1 %v4801_v7  ;;  %v2590_v63 = vpack.c.bf16 %v5812_v46, %v5805_v33  ;;  %v4813_v33 = vld [vmem:[%s5960_s6 + $0x228] sm:$0xff]   ;;  %v4822_v46 = vld [vmem:[%s5962_s8 + $0x30] sm:$0xff]  }
 0x1f4   : > { %4472 = vmatprep.subr.bf16.mxu1 %v4802_v37  ;;  %4552 = vmatprep.subr.bf16.mxu0 %v4822_v46 }
 0x1f5   : > { %4553 = vmatpush3.bf16.msra.mxu0 %v4822_v46 }
 0x1f6   : > { %4441 = vmatmul.mubr.bf16.gmra.mrb[12].mxu1 %v2318_v31 }
 0x1f7   : > { %4473 = vmatpush3.bf16.msra.mxu1 %v4802_v37  ;;  %4484 = vmatprep.mubr.bf16.mxu1 %v2588_v60  ;;  %v4809_v60 = vld [vmem:[%s5960_s6 + $0x208] sm:$0xff]  }
 0x1f8   : > { %4474 = vmatprep.subr.bf16.mxu1 %v4803_v57 }
 0x1fb   : > { %4475 = vmatpush3.bf16.msra.mxu1 %v4803_v57 }
 0x1fc   : > { %4476 = vmatprep.subr.bf16.mxu1 %v4804_v12 }
 0x1ff   : > { %4477 = vmatpush3.bf16.msra.mxu1 %v4804_v12 }
 0x200   : > { %4478 = vmatprep.subr.bf16.mxu1 %v4805_v52 }
 0x201   : > { %v4510_v31 = vpop.f32.mrb[64].mxu0 }
 0x202   : > { %v2806_v32 = vadd.f32 %v5723_v30, %v4510_v31  ;;  %v2797_v2 = vpop.f32.mrb[65].mxu0 }
 0x203   : > { %4479 = vmatpush3.bf16.msra.mxu1 %v4805_v52  ;;  %v2798_v19 = vadd.f32 %v5723_v30, %v2797_v2  ;;  %v4511_v36 = vpop.f32.mrb[66].mxu0 }
 0x204   : > { %4480 = vmatprep.subr.bf16.mxu1 %v4806_v35  ;;  %v2830_v3 = vmax.f32 %v2806_v32, 0.0  ;;  %v2809_v38 = vadd.f32 %v5723_v30, %v4511_v36  ;;  %v2800_v4 = vpop.f32.mrb[67].mxu0 }
 0x205   : > { %v2828_v25 = vmax.f32 %v2798_v19, 0.0  ;;  %v2801_v8 = vadd.f32 %v5723_v30, %v2800_v4 }
 0x206   : > { %v5846_v20 = vmul.f32 %v3799_v55, %v2830_v3  ;;  %v2831_v42 = vmax.f32 %v2809_v38, 0.0 }
 0x207   : > { %4481 = vmatpush3.bf16.msra.mxu1 %v4806_v35  ;;  %v2853_v50 = vmul.f32 %v3795_v29, %v2828_v25  ;;  %v2829_v14 = vmax.f32 %v2801_v8, 0.0 }
 0x208   : > { %4482 = vmatprep.subr.bf16.mxu1 %v4807_v61  ;;  %v2856_v51 = vmul.f32 %v3800_v40, %v2831_v42 }
 0x209   : > { %v2854_v47 = vmul.f32 %v3796_v45, %v2829_v14  ;;  %v4514_v49 = vpop.f32.mrb[68].mxu0 }
 0x20a   : > { %v2862_v10 = vpack.c.bf16 %v2856_v51, %v5846_v20  ;;  %v2822_v41 = vadd.f32 %v5723_v30, %v4514_v49  ;;  %v2813_v53 = vpop.f32.mrb[69].mxu0 }
 0x20b   : > { %4483 = vmatpush3.bf16.msra.mxu1 %v4807_v61  ;;  %v2814_v54 = vadd.f32 %v5723_v30, %v2813_v53  ;;  %v4515_v56 = vpop.f32.mrb[70].mxu0  ;;  %v2861_v58 = vpack.c.bf16 %v2854_v47, %v2853_v50  ;;  %v3653_v47 = vld [vmem:[%s5963_s9] ss:$0 sm:$0xff] }
 0x20c   : > { %4516 = vmatprep.subr.bf16.mxu1 %v4808_v39  ;;  %v2834_v0 = vmax.f32 %v2822_v41, 0.0  ;;  %v2825_v1 = vadd.f32 %v5723_v30, %v4515_v56  ;;  %v2816_v7 = vpop.f32.mrb[71].mxu0 }
 0x20d   : > { %v2832_v9 = vmax.f32 %v2814_v54, 0.0  ;;  %v2817_v11 = vadd.f32 %v5723_v30, %v2816_v7 }
 0x20e   : > { %4485 = vmatmul.mubr.bf16.vlgmr.msra.gmra.mrb[8].mxu1 %v2589_v17  ;;  %v2859_v21 = vmul.f32 %v3807_v44, %v2834_v0  ;;  %v2835_v5 = vmax.f32 %v2825_v1, 0.0  ;;  %v4812_v17 = vld [vmem:[%s5960_s6 + $0x220] sm:$0xff]  }
 0x20f   : > { %4517 = vmatpush3.bf16.msra.mxu1 %v4808_v39  ;;  %4488 = vmatprep.mubr.bf16.mxu1 %v2590_v63  ;;  %v2857_v23 = vmul.f32 %v3803_v24, %v2832_v9  ;;  %v2833_v18 = vmax.f32 %v2817_v11, 0.0  ;;  %v3652_v63 = vld [vmem:[%s5961_s7] ss:$0 sm:$0xff] }
 0x210   : > { %4518 = vmatprep.subr.bf16.mxu1 %v4809_v60  ;;  %v2860_v30 = vmul.f32 %v3808_v15, %v2835_v5 }
 0x211   : > { %v2858_v34 = vmul.f32 %v3804_v16, %v2833_v18 }
 0x212   : > { %v2864_v37 = vpack.c.bf16 %v2860_v30, %v2859_v21 }
 0x213   : > { %4519 = vmatpush3.bf16.msra.mxu1 %v4809_v60  ;;  %v2863_v22 = vpack.c.bf16 %v2858_v34, %v2857_v23 }
 0x214   : > { %4520 = vmatprep.subr.bf16.mxu1 %v4810_v28 }
 0x216   : > { %4489 = vmatmul.mubr.bf16.gmra.mrb[12].mxu1 %v2591_v13  ;;  %v4823_v13 = vld [vmem:[%s5962_s8 + $0x38] sm:$0xff]  }
 0x217   : > { %4521 = vmatpush3.bf16.msra.mxu1 %v4810_v28  ;;  %4532 = vmatprep.mubr.bf16.mxu1 %v2861_v58 }
 0x218   : > { %4522 = vmatprep.subr.bf16.mxu1 %v4811_v48  ;;  %4554 = vmatprep.subr.bf16.mxu0 %v4823_v13 }
 0x219   : > { %4555 = vmatpush3.bf16.msra.mxu0 %v4823_v13 }
 0x21b   : > { %4523 = vmatpush3.bf16.msra.mxu1 %v4811_v48 }
 0x21c   : > { %4524 = vmatprep.subr.bf16.mxu1 %v4812_v17 }
 0x21f   : > { %4525 = vmatpush3.bf16.msra.mxu1 %v4812_v17 }
 0x220   : > { %4526 = vmatprep.subr.bf16.mxu1 %v4813_v33 }
 0x223   : > { %4527 = vmatpush3.bf16.msra.mxu1 %v4813_v33 }
 0x224   : > { %4528 = vmatprep.subr.bf16.mxu1 %v4814_v26 }
 0x227   : > { %4529 = vmatpush3.bf16.msra.mxu1 %v4814_v26 }
 0x228   : > { %4530 = vmatprep.subr.bf16.mxu1 %v4815_v62 }
 0x22b   : > { %4531 = vmatpush3.bf16.msra.mxu1 %v4815_v62 }
 0x22e   : > { %4533 = vmatmul.mubr.bf16.vlgmr.msra.gmra.mrb[8].mxu1 %v2862_v10  ;;  %v4570_v10 = vadd.f32 %v3653_v47, %v3278_v43 }
 0x22f   : > { %4536 = vmatprep.mubr.bf16.mxu1 %v2863_v22 }
 0x236   : > { %4537 = vmatmul.mubr.bf16.gmra.mrb[12].mxu1 %v2864_v37 }
 0x301   : > { %v4534_v57 = vpop.f32.mrb[8].mxu1 }
 0x302   : > { %v3012_v12 = vadd.f32 %v4534_v57, %v3652_v63  ;;  %v2964_v52 = vpop.f32.mrb[9].mxu1 }
 0x303   : > { %v3010_v59 = vadd.f32 %v3652_v63, %v2964_v52  ;;  %v4535_v35 = vpop.f32.mrb[10].mxu1 }
 0x304   : > { %v3013_v6 = vadd.f32 %v4535_v35, %v3652_v63  ;;  %v2967_v31 = vpop.f32.mrb[11].mxu1  ;;  %v3020_v55 = vmax.f32 %v3012_v12, 0.0 }
 0x305   : > { %v3011_v32 = vadd.f32 %v3652_v63, %v2967_v31  ;;  %v3018_v19 = vmax.f32 %v3010_v59, 0.0 }
 0x306   : > { %v3021_v2 = vmax.f32 %v3013_v6, 0.0 }
 0x307   : > { %v3019_v29 = vmax.f32 %v3011_v32, 0.0 }
 0x308   : > { %v3027_v36 = vpack.c.bf16 %v3021_v2, %v3020_v55 }
 0x309   : > { %v3026_v61 = vpack.c.bf16 %v3019_v29, %v3018_v19  ;;  %v4538_v3 = vpop.f32.mrb[12].mxu1 }
 0x30a   : > { %v3016_v38 = vadd.f32 %v4538_v3, %v3652_v63  ;;  %v2980_v40 = vpop.f32.mrb[13].mxu1 }
 0x30b   : > { %v3014_v4 = vadd.f32 %v3652_v63, %v2980_v40  ;;  %v4539_v25 = vpop.f32.mrb[14].mxu1  ;;  %4556 = vmatprep.mubr.bf16.mxu0 %v3026_v61 }
 0x30c   : > { %v3017_v8 = vadd.f32 %v4539_v25, %v3652_v63  ;;  %v2983_v45 = vpop.f32.mrb[15].mxu1  ;;  %4557 = vmatmul.mubr.bf16.vlgmr.msra.gmra.mrb[0].mxu0 %v3027_v36  ;;  %v3024_v42 = vmax.f32 %v3016_v38, 0.0 }
 0x30d   : > { %v3015_v20 = vadd.f32 %v3652_v63, %v2983_v45  ;;  %v3022_v14 = vmax.f32 %v3014_v4, 0.0 }
 0x30e   : > { %v3025_v50 = vmax.f32 %v3017_v8, 0.0 }
 0x30f   : > { %v3023_v27 = vmax.f32 %v3015_v20, 0.0 }
 0x310   : > { %v3029_v39 = vpack.c.bf16 %v3025_v50, %v3024_v42 }
 0x311   : > { %v3028_v51 = vpack.c.bf16 %v3023_v27, %v3022_v14 }
 0x313   : > { %4560 = vmatprep.mubr.bf16.mxu0 %v3028_v51 }
 0x314   : > { %4561 = vmatmul.mubr.bf16.gmra.mrb[4].mxu0 %v3029_v39 }
 0x3df   : > { %v4558_v49 = vpop.f32.mrb[0].mxu0 }
 0x3e0   : > { %v4564_v41 = vadd.f32 %v4558_v49, %v3278_v43  ;;  %v3135_v44 = vpop.f32.mrb[1].mxu0 }
 0x3e1   : > { %v4566_v53 = vadd.f32 %v3278_v43, %v3135_v44  ;;  %v4559_v54 = vpop.f32.mrb[2].mxu0 }
 0x3e2   : > { %v3138_v24 = vpop.f32.mrb[3].mxu0  ;;  %v4565_v56 = vadd.f32 %v4564_v41, %v3653_v47  ;;  %v4569_v1 = vadd.f32 %v4570_v10, %v4559_v54 }
 0x3e3   : > { %v4567_v58 = vadd.f32 %v4566_v53, %v3653_v47  ;;  %v4571_v60 = vadd.f32 %v4570_v10, %v3138_v24 }
 0x3e4   : > { %v3176_v7 = vmax.f32 %v4565_v56, 0.0  ;;  %v3177_v21 = vmax.f32 %v4569_v1, 0.0 }
 0x3e5   : > { %v3174_v0 = vmax.f32 %v4567_v58, 0.0  ;;  %v3175_v15 = vmax.f32 %v4571_v60, 0.0 }
 0x3e7   : > { %v3182_v9 = vadd.f32 %v3175_v15, %v3174_v0  ;;  %v4562_v11 = vpop.f32.mrb[4].mxu0 }
 0x3e8   : > { %v3151_v16 = vpop.f32.mrb[5].mxu0  ;;  %v4573_v30 = vadd.f32 %v4570_v10, %v4562_v11 }
 0x3e9   : > { %v3183_v5 = vadd.f32 %v3182_v9, %v3176_v7  ;;  %v4575_v23 = vadd.f32 %v4570_v10, %v3151_v16  ;;  %v4563_v18 = vpop.f32.mrb[6].mxu0 }
 0x3ea   : > { %v3154_v28 = vpop.f32.mrb[7].mxu0  ;;  %v4577_v17 = vadd.f32 %v4570_v10, %v4563_v18  ;;  %v3180_v26 = vmax.f32 %v4573_v30, 0.0 }
 0x3eb   : > { %v3178_v34 = vmax.f32 %v4575_v23, 0.0  ;;  %v3184_v37 = vadd.f32 %v3183_v5, %v3177_v21  ;;  %v4579_v22 = vadd.f32 %v4570_v10, %v3154_v28 }
 0x3ec   : > { %v3181_v46 = vmax.f32 %v4577_v17, 0.0 }
 0x3ed   : > { %v3185_v48 = vadd.f32 %v3184_v37, %v3178_v34  ;;  %v3179_v33 = vmax.f32 %v4579_v22, 0.0 }
 0x3ef   : > { %v3186_v62 = vadd.f32 %v3185_v48, %v3179_v33 }
 0x3f1   : > { %v3187_v13 = vadd.f32 %v3186_v62, %v3180_v26 }
 0x3f3   : > { %v3188_v63 = vadd.f32 %v3187_v13, %v3181_v46 }
 0x3f5   : > { %v3189_v57 = vrot.slane %v3188_v63, 4 }
 0x3f7   : > { %v3190_v12 = vadd.f32 %v3189_v57, %v3188_v63 }
 0x3f9   : > { %v3191_v52 = vrot.slane %v3190_v12, 2 }
 0x3fb   : > { %v3192_v59 = vadd.f32 %v3191_v52, %v3190_v12 }
 0x3fd   : > { %v3193_v35 = vrot.slane %v3192_v59, 1 }
 0x3ff   : > { %v3194_v6 = vadd.f32 %v3193_v35, %v3192_v59 }
 0x401   : > { %v3195_v31 = vmul.f32 0.015625, %v3194_v6 }
 0x403   : > { %3196 = vst [vmem:[%s351_s28] sm:$0x1] %v3195_v31 }
 0x404   : > { %4839 = shalt.err (!%p4836_p3)
}
 0x405   : > { %s4840_s21 = scalar_lea.hbm %s5912_s12, 16  ;;  %s4844_s30 = scalar_lea.hbm %s5964_s10, 32 }
 0x406   : > { %p4841_p4 = scmp.ne.s32.totalorder %s5912_s12, %s4840_s21  ;;  %p4845_p9 = scmp.lt.u32.totalorder %s5912_s12, %s5964_s10 }
 0x407   : > { %p4846_p10 = scmp.lt.u32.totalorder %s4844_s30, %s4840_s21  ;;  %p4848_p12 = scmp.lt.u32.totalorder %s4840_s21, %s5912_s12 }
 0x408   : > { %p4842_p7 = pnand %p4841_p4, %p4984_p5 }
 0x409   : > { %p4847_p11 = por %p4846_p10, %p4845_p9 }
 0x40a   : > { %p4843_p8 = pneg %p4842_p7 }
 0x40b   : > { %p4849_p13 = por %p4848_p12, %p4847_p11 }
 0x40d   : > { %p4850_p0 = pnand %p4849_p13, %p4843_p8 }
 0x40f   : > { %4853 = shalt.err (!%p4850_p0)
}
 0x410   : > { %4653 = dma.vmem_to_hbm [thread:$0]  (%p4984_p5), %s5914_s29, 16, %s5912_s12, %s3198_s18  }
 0x411 PF: > { %p4659_p1 = scmp.ge.s32.totalorder %s4888_s16, 2  ;;  %s3222_s20 = sand.u32 1, %s4876_s13  }
 0x412   : > { %s3223_s25 = scalar_lea.sflag [#allocation3], %s3222_s20 }
 0x413   : > { %p4656_p2 = pnand %p4659_p1, %p4988_p6 }
 0x415   : > { %4871 = dma.done.wait (!%p4656_p2), %s3223_s25, 16  }
 0x416   : > { %4873 = vsyncadd (!%p4656_p2), %s3223_s25, 4294967280  ;;  %p20_p3 = scmp.ge.s32.totalorder %s4971_s19, 4   ;;  %s5967_s13 = smov %s4880_s14 }
 0x417   : > { %s5968_s14 = smov %s4884_s15  ;;  %s5969_s15 = smov %s4982_s22 }
 0x418   : > { %s5970_s16 = smov %s4971_s19  ;;  %22 = sbr.rel (!%p20_p3) target bundleno = 3 (0x3), region = 119 }
 0x41f   :  { %3227 = vsyncpa [#allocation3], 1 }
 0x420   :  { %3229 = vsyncpa [#allocation3 + $0x1], 1 }

</bundles_post_ra>
